<compile_context>
chip_gen: v7x
topology: tpu7x:2x2x1
jax: 0.10.0
libtpu: 0.0.40
codegen_flags: <defaults>
</compile_context>

<pallas_src>
import numpy as np

import jax
import jax.numpy as jnp
from jax.experimental import pallas as pl
from jax.experimental.pallas import tpu as pltpu  # noqa: F401  (TPU backend assumed)

# ----------------------- small synthetic configuration -----------------------
B = 2
IN_CH = 4
OUT_CH = 3
INP_SHAPE = (16, 16)          # [H, W]
PATCH = 8                     # patch_size = [8, 8]
EMBED = 32
DEPTH = 2
NUM_BLOCKS = 4                # block-diagonal blocks in spectral weights
MLP_RATIO = 2.0
SPARSITY = 0.01               # softshrink lambda
# hard_thresholding_fraction = 1.0 (default) -> all spectral modes are kept at these dims.

H_TOK = INP_SHAPE[0] // PATCH + 1          # 3
W_TOK = INP_SHAPE[1] // PATCH + 1          # 3
NUM_PATCHES = H_TOK * W_TOK                # 9
BLOCK_SIZE = EMBED // NUM_BLOCKS           # 8
MLP_HIDDEN = int(EMBED * MLP_RATIO)        # 64
HEAD_DIM = OUT_CH * PATCH * PATCH          # 192
HEAD_PAD = 256                             # lane-dense padded head width
PATCH_DIM = IN_CH * PATCH * PATCH          # 256
W_FREQ = W_TOK // 2 + 1                    # 2   (rfft width)
M_TOK = B * NUM_PATCHES                    # 18  (all tokens, batch-major)
M_FREQ = B * H_TOK * W_FREQ                # 12  (all rfft2 positions, batch-major)
CW = 2 * EMBED                             # 64  (lane-concat real|imag width)
EPS = 1e-6                                 # LayerNorm eps

assert MLP_HIDDEN == CW, "packing below assumes mlp_hidden == 2*embed (== 64)"


# ------------------------------- kernel helpers -------------------------------
def _gelu(x):
    # tanh-approximate GELU: one EUP tanh + a few VALU ops instead of a 12-op erf chain.
    # TODO(synk): PyTorch nn.GELU defaults to exact erf; lax.erf lowering in Mosaic is not
    # guaranteed, so the tanh approximation (<~1e-3 rel. difference) is used instead.
    c = 0.7978845608028654  # sqrt(2/pi)
    return 0.5 * x * (1.0 + jnp.tanh(c * (x + 0.044715 * x * x * x)))


def _softshrink(v, lam):
    return jnp.where(v > lam, v - lam, jnp.where(v < -lam, v + lam, 0.0))


def _layernorm(x, g, b):
    # one-pass mean / E[x^2]; both reductions are independent -> shorter serial XLU chain
    mu = jnp.mean(x, axis=-1, keepdims=True)
    ms = jnp.mean(x * x, axis=-1, keepdims=True)
    var = ms - mu * mu
    return (x - mu) * jax.lax.rsqrt(var + EPS) * g + b


# ------------------------ DFT matrices (host constants) ------------------------
def _make_dft_mats():
    """Real matrices reproducing rfft2/irfft2(norm='ortho') on a (H_TOK, W_TOK) grid,
    block-diagonalized over the batch so the kernel works on flat (tokens, C) slabs."""
    n_sp = H_TOK * W_TOK
    n_fr = H_TOK * W_FREQ
    fr = np.zeros((n_fr, n_sp), np.float64)
    fi = np.zeros((n_fr, n_sp), np.float64)
    for k in range(n_sp):
        e = np.zeros((H_TOK, W_TOK))
        e.flat[k] = 1.0
        s = np.fft.rfft2(e, norm="ortho").reshape(-1)
        fr[:, k] = s.real
        fi[:, k] = s.imag
    gr = np.zeros((n_sp, n_fr), np.float64)
    gi = np.zeros((n_sp, n_fr), np.float64)
    for k in range(n_fr):
        er = np.zeros((H_TOK, W_FREQ), np.complex128)
        er.flat[k] = 1.0
        gr[:, k] = np.fft.irfft2(er, s=(H_TOK, W_TOK), norm="ortho").reshape(-1)
        ei = np.zeros((H_TOK, W_FREQ), np.complex128)
        ei.flat[k] = 1.0j
        gi[:, k] = np.fft.irfft2(ei, s=(H_TOK, W_TOK), norm="ortho").reshape(-1)
    eye_b = np.eye(B)
    fr, fi = np.kron(eye_b, fr), np.kron(eye_b, fi)   # (M_FREQ, M_TOK)
    gr, gi = np.kron(eye_b, gr), np.kron(eye_b, gi)   # (M_TOK, M_FREQ)
    return fr, fi, gr, gi


# --------------------------------- fused kernel ---------------------------------
def _fused_forward_kernel(
    patches_ref,                 # (M_TOK, PATCH_DIM)      bf16
    embed_add_ref,               # (M_TOK, EMBED)          f32   conv bias + tiled pos_embed
    dftf_ref,                    # (2, M_FREQ, M_TOK)      bf16  [fr, fi]
    dftg_ref,                    # (2, M_TOK, M_FREQ)      bf16  [gr, gi]
    wbig_ref,                    # (DEPTH*4, CW, CW)       bf16  per depth: W1c, W2c, fc1w, fc2w
    pw_ref,                      # (PATCH_DIM, EMBED)      bf16
    hw_ref,                      # (EMBED, HEAD_PAD)       bf16
    vecs_ref,                    # (DEPTH, 8, CW)          f32   norm / bias vectors
    o_ref,                       # (M_TOK, HEAD_PAD)       f32
):
    f32 = jnp.float32
    bf16 = jnp.bfloat16

    # ---- patch embed: per-patch matmul + (conv bias + pos_embed) ----
    x = (jnp.dot(patches_ref[...], pw_ref[...], preferred_element_type=f32)
         + embed_add_ref[...])                                       # (18, 32) f32

    fr = dftf_ref[0]                                                  # (12, 18) bf16
    fi = dftf_ref[1]
    gr = dftg_ref[0]                                                  # (18, 12) bf16
    gi = dftg_ref[1]

    # DEPTH = 2 -> static Python loop, fully unrolled at trace time.
    for d in range(DEPTH):
        # per-depth bias / norm vectors (all static, aligned slices of one slab)
        n1g = vecs_ref[d, 0:1, 0:EMBED]
        n1b = vecs_ref[d, 1:2, 0:EMBED]
        b1c = vecs_ref[d, 2:3, :]                                     # (1, 64) [b1r | b1i]
        b2c = vecs_ref[d, 3:4, :]
        n2g = vecs_ref[d, 4:5, 0:EMBED]
        n2b = vecs_ref[d, 5:6, 0:EMBED]
        fc1b = vecs_ref[d, 6:7, :]
        fc2b = vecs_ref[d, 7:8, 0:EMBED]

        residual = x
        xn = _layernorm(x, n1g, n1b)                                  # (18, 32) f32
        xnb = xn.astype(bf16)

        # ---- AFNO2D spectral filter: rfft2 as matmuls against tiny DFT matrices ----
        xr = jnp.dot(fr, xnb, preferred_element_type=f32)             # (12, 32) f32
        xi = jnp.dot(fi, xnb, preferred_element_type=f32)

        # complex block-diag 2-layer MLP in lane-concatenated real form (width 64)
        #   o1 = relu(xr @ [w1r|w1i] + xi @ [-w1i|w1r] + [b1r|b1i])
        w1_top = wbig_ref[4 * d + 0, 0:EMBED, :]                      # (32, 64) bf16
        w1_bot = wbig_ref[4 * d + 0, EMBED:CW, :]
        o1 = jnp.maximum(
            jnp.dot(xr.astype(bf16), w1_top, preferred_element_type=f32)
            + jnp.dot(xi.astype(bf16), w1_bot, preferred_element_type=f32)
            + b1c, 0.0)                                               # (12, 64) f32
        o2 = (jnp.dot(o1.astype(bf16), wbig_ref[4 * d + 1],
                      preferred_element_type=f32) + b2c)              # (12, 64) f32
        y = _softshrink(o2, SPARSITY)                                 # f32 (threshold-safe)

        # irfft2 as matmuls (f32 accumulate)
        yr = y[:, 0:EMBED].astype(bf16)
        yi = y[:, EMBED:CW].astype(bf16)
        filt = (jnp.dot(gr, yr, preferred_element_type=f32)
                + jnp.dot(gi, yi, preferred_element_type=f32))        # (18, 32) f32

        x = filt + xn + residual          # AFNO internal skip + Block double skip
        residual = x

        # ---- MLP (LayerNorm -> fc1 -> GELU -> fc2) + skip ----
        xn2 = _layernorm(x, n2g, n2b)
        fc1w = wbig_ref[4 * d + 2, 0:EMBED, :]                        # (32, 64) bf16
        h = _gelu(jnp.dot(xn2.astype(bf16), fc1w,
                          preferred_element_type=f32) + fc1b)         # (18, 64) f32
        fc2w = wbig_ref[4 * d + 3, :, 0:EMBED]                        # (64, 32) bf16
        y2 = (jnp.dot(h.astype(bf16), fc2w,
                      preferred_element_type=f32) + fc2b)             # (18, 32) f32
        x = y2 + residual

    # ---- head (Linear, no bias); padded to 256 lanes for unmasked stores ----
    o_ref[...] = jnp.dot(x.astype(bf16), hw_ref[...], preferred_element_type=f32)


def _full_spec(shape):
    nd = len(shape)
    return pl.BlockSpec(shape, lambda *_, _nd=nd: (0,) * _nd)


def _fused_forward(patches_bf16, kp):
    args = [
        patches_bf16, kp["embed_add"], kp["dft_f"], kp["dft_g"],
        kp["wbig"], kp["patch_w"], kp["head_w"], kp["vecs"],
    ]
    return pl.pallas_call(
        _fused_forward_kernel,
        out_shape=jax.ShapeDtypeStruct((M_TOK, HEAD_PAD), jnp.float32),
        in_specs=[_full_spec(a.shape) for a in args],
        out_specs=_full_spec((M_TOK, HEAD_PAD)),
    )(*args)


# ---------------------------------- parameters ----------------------------------
def init_params(key):
    """Raw parameters mirroring the PyTorch module's structure/initialization."""
    ks = iter(jax.random.split(key, 64))

    def tnrm(shape, std=0.02):
        return (std * jax.random.truncated_normal(next(ks), -2.0, 2.0, shape)).astype(jnp.float32)

    params = {
        "patch_w": tnrm((EMBED, IN_CH, PATCH, PATCH)),       # Conv2d weight (E, C, P, P)
        "patch_b": jnp.zeros((EMBED,), jnp.float32),         # Conv2d bias
        "pos_embed": tnrm((NUM_PATCHES, EMBED)),             # trunc_normal std=0.02
        "head_w": tnrm((EMBED, HEAD_DIM)),                   # stored (in, out); no bias
        "blocks": [],
    }
    for _ in range(DEPTH):
        params["blocks"].append({
            "norm1_g": jnp.ones((EMBED,), jnp.float32),
            "norm1_b": jnp.zeros((EMBED,), jnp.float32),
            "w1": 0.02 * jax.random.normal(next(ks), (2, NUM_BLOCKS, BLOCK_SIZE, BLOCK_SIZE), jnp.float32),
            "b1": 0.02 * jax.random.normal(next(ks), (2, NUM_BLOCKS, BLOCK_SIZE), jnp.float32),
            "w2": 0.02 * jax.random.normal(next(ks), (2, NUM_BLOCKS, BLOCK_SIZE, BLOCK_SIZE), jnp.float32),
            "b2": 0.02 * jax.random.normal(next(ks), (2, NUM_BLOCKS, BLOCK_SIZE), jnp.float32),
            "norm2_g": jnp.ones((EMBED,), jnp.float32),
            "norm2_b": jnp.zeros((EMBED,), jnp.float32),
            "fc1_w": tnrm((EMBED, MLP_HIDDEN)),              # stored (in, out)
            "fc1_b": jnp.zeros((MLP_HIDDEN,), jnp.float32),
            "fc2_w": tnrm((MLP_HIDDEN, EMBED)),
            "fc2_b": jnp.zeros((EMBED,), jnp.float32),
        })
    return params


def _block_diag_dense(w):
    # w: (NUM_BLOCKS, bs, bs) blockwise out[b,o] = sum_i in[b,i]*w[b,i,o]
    # -> dense (E, E) with dense[b*bs+i, b*bs+o] = w[b,i,o] (zeros off-diagonal).
    eye = jnp.eye(NUM_BLOCKS, dtype=w.dtype)
    return jnp.einsum("bc,bio->bico", eye, w).reshape(EMBED, EMBED)


def _complex_cat_weight(w):
    # (2, NUM_BLOCKS, bs, bs) -> (2E, 2E) so that [xr|xi] @ W == [xr@wr - xi@wi | xr@wi + xi@wr]
    wr = _block_diag_dense(w[0])
    wi = _block_diag_dense(w[1])
    top = jnp.concatenate([wr, wi], axis=1)          # xr rows
    bot = jnp.concatenate([-wi, wr], axis=1)         # xi rows
    return jnp.concatenate([top, bot], axis=0)       # (64, 64)


def _pad_vec(v, n=CW):
    v = v.reshape(-1)
    return jnp.pad(v, (0, n - v.shape[0]))


def prepare_params(params):
    """One-time packing of raw params into the fused-kernel slab layout (bf16 MXU operands)."""
    fr, fi, gr, gi = _make_dft_mats()
    bf16 = jnp.bfloat16

    kp = {
        "patch_w": params["patch_w"].reshape(EMBED, PATCH_DIM).T.astype(bf16),   # (256, 32)
        # conv bias + batch-tiled positional embedding, fused into one additive f32 slab
        "embed_add": (jnp.tile(params["pos_embed"], (B, 1))
                      + params["patch_b"][None, :]).astype(jnp.float32),
        "dft_f": jnp.asarray(np.stack([fr, fi]), bf16),                          # (2, 12, 18)
        "dft_g": jnp.asarray(np.stack([gr, gi]), bf16),                          # (2, 18, 12)
        # lane-dense head: pad 192 -> 256 output columns (cropped in XLA epilogue)
        "head_w": jnp.pad(params["head_w"],
                          ((0, 0), (0, HEAD_PAD - HEAD_DIM))).astype(bf16),      # (32, 256)
    }

    mats, vec_rows = [], []
    for bp in params["blocks"]:
        mats.extend([
            _complex_cat_weight(bp["w1"]),                              # W1c (64, 64)
            _complex_cat_weight(bp["w2"]),                              # W2c (64, 64)
            jnp.pad(bp["fc1_w"], ((0, CW - EMBED), (0, 0))),            # (64, 64), rows 32:64 zero
            jnp.pad(bp["fc2_w"], ((0, 0), (0, CW - EMBED))),            # (64, 64), cols 32:64 zero
        ])
        vec_rows.append(jnp.stack([
            _pad_vec(bp["norm1_g"]), _pad_vec(bp["norm1_b"]),
            jnp.concatenate([bp["b1"][0].reshape(-1), bp["b1"][1].reshape(-1)]),  # b1c (64,)
            jnp.concatenate([bp["b2"][0].reshape(-1), bp["b2"][1].reshape(-1)]),  # b2c (64,)
            _pad_vec(bp["norm2_g"]), _pad_vec(bp["norm2_b"]),
            _pad_vec(bp["fc1_b"]), _pad_vec(bp["fc2_b"]),
        ], axis=0))                                                     # (8, 64)

    kp["wbig"] = jnp.stack(mats, axis=0).astype(bf16)                   # (DEPTH*4, 64, 64)
    kp["vecs"] = jnp.stack(vec_rows, axis=0).astype(jnp.float32)        # (DEPTH, 8, 64)
    return kp


# ----------------------------------- forward -----------------------------------
def wrap_pad_2d(x, pad):
    # WrapConv2d padding: circular on W, flip ("symmetric") on H.  x: (B, C, H, W)
    left = x[..., -pad:]
    right = x[..., :pad]
    x = jnp.concatenate([left, x, right], axis=-1)
    upper = jnp.flip(x[:, :, -pad:, :], axis=2)
    lower = jnp.flip(x[:, :, :pad, :], axis=2)
    return jnp.concatenate([lower, x, upper], axis=2)


def extract_patches(x):
    # TODO(synk): wrap padding + im2col is a flip/concat gather pattern; kept as a tiny
    # XLA prologue rather than in-kernel dynamic indexing.
    b, c, _, _ = x.shape
    pad = PATCH // 2
    xp = wrap_pad_2d(x, pad)                                   # (B, C, H+P, W+P)
    patches = xp.reshape(b, c, H_TOK, PATCH, W_TOK, PATCH)
    patches = patches.transpose(0, 2, 4, 1, 3, 5).reshape(b * NUM_PATCHES, c * PATCH * PATCH)
    return patches                                             # rows: (b, ht, wt); cols: (c, ph, pw)


def forward(x, kparams):
    bsz = x.shape[0]
    patches = extract_patches(x).astype(jnp.bfloat16)          # (B*9, 256)  XLA layout prologue
    y = _fused_forward(patches, kparams)                       # (B*9, 256)  single fused Pallas kernel
    y = y[:, :HEAD_DIM]                                        # crop lane padding
    # de-patchify exactly as in the PyTorch forward (tiny XLA epilogue)
    y = y.reshape(bsz, H_TOK, W_TOK, PATCH, PATCH, OUT_CH)
    y = jnp.transpose(y, (0, 5, 1, 3, 2, 4))                   # (B, out, h, P, w, P)
    y = y.reshape(bsz, OUT_CH, H_TOK * PATCH, W_TOK * PATCH)   # (B, out, H+P, W+P)
    return y[:, :, PATCH // 2:(-PATCH) // 2, PATCH // 2:(-PATCH) // 2]


# ------------------------------------- main -------------------------------------
if __name__ == "__main__":
    key = jax.random.PRNGKey(0)
    kx, kparam = jax.random.split(key)
    x = jax.random.normal(kx, (B, IN_CH, INP_SHAPE[0], INP_SHAPE[1]), jnp.float32)

    params = init_params(kparam)
    kparams = prepare_params(params)   # one-time packing: 8 DMA slabs, bf16 MXU operands

    fwd = jax.jit(forward)
    out = fwd(x, kparams)
    out = jax.block_until_ready(out)

    assert out.shape == (B, OUT_CH, INP_SHAPE[0], INP_SHAPE[1]), out.shape
    assert bool(jnp.all(jnp.isfinite(out)))
    print("KERNEL_OK")
</pallas_src>

<mosaic_0001>
module attributes {stable_mosaic.version = 11 : i64} {
  func.func @_fused_forward_kernel(%arg0: memref<18x256xbf16, #tpu.memory_space<vmem>>, %arg1: memref<18x32xf32, #tpu.memory_space<vmem>>, %arg2: memref<2x12x18xbf16, #tpu.memory_space<vmem>>, %arg3: memref<2x18x12xbf16, #tpu.memory_space<vmem>>, %arg4: memref<8x64x64xbf16, #tpu.memory_space<vmem>>, %arg5: memref<256x32xbf16, #tpu.memory_space<vmem>>, %arg6: memref<32x256xbf16, #tpu.memory_space<vmem>>, %arg7: memref<2x8x64xf32, #tpu.memory_space<vmem>>, %arg8: memref<18x256xf32, #tpu.memory_space<vmem>>) attributes {dimension_semantics = [], scalar_prefetch = 0 : i64, scratch_operands = 0 : i64, tpu.core_type = #tpu.core_type<tc>} {
    %c0 = arith.constant 0 : index
    %c0_0 = arith.constant 0 : index
    %0 = vector.load %arg0[%c0, %c0_0] : memref<18x256xbf16, #tpu.memory_space<vmem>>, vector<18x256xbf16>
    %c0_1 = arith.constant 0 : index
    %c0_2 = arith.constant 0 : index
    %1 = vector.load %arg5[%c0_1, %c0_2] : memref<256x32xbf16, #tpu.memory_space<vmem>>, vector<256x32xbf16>
    %cst = arith.constant dense<0.000000e+00> : vector<18x32xf32>
    %2 = tpu.matmul %0, %1, %cst {dimension_numbers = #tpu.dot_dimension_numbers<[1], [0], [0], [1], [0, 0, 1, 1], [], []>} : vector<18x256xbf16>, vector<256x32xbf16>, vector<18x32xf32> -> vector<18x32xf32>
    %c0_3 = arith.constant 0 : index
    %c0_4 = arith.constant 0 : index
    %3 = vector.load %arg1[%c0_3, %c0_4] : memref<18x32xf32, #tpu.memory_space<vmem>>, vector<18x32xf32>
    %4 = arith.addf %2, %3 : vector<18x32xf32>
    %c0_5 = arith.constant 0 : index
    %c0_6 = arith.constant 0 : index
    %c0_7 = arith.constant 0 : index
    %5 = vector.load %arg2[%c0_5, %c0_6, %c0_7] : memref<2x12x18xbf16, #tpu.memory_space<vmem>>, vector<1x12x18xbf16>
    %6 = vector.shape_cast %5 : vector<1x12x18xbf16> to vector<12x18xbf16>
    %c1 = arith.constant 1 : index
    %c0_8 = arith.constant 0 : index
    %c0_9 = arith.constant 0 : index
    %7 = vector.load %arg2[%c1, %c0_8, %c0_9] : memref<2x12x18xbf16, #tpu.memory_space<vmem>>, vector<1x12x18xbf16>
    %8 = vector.shape_cast %7 : vector<1x12x18xbf16> to vector<12x18xbf16>
    %c0_10 = arith.constant 0 : index
    %c0_11 = arith.constant 0 : index
    %c0_12 = arith.constant 0 : index
    %9 = vector.load %arg3[%c0_10, %c0_11, %c0_12] : memref<2x18x12xbf16, #tpu.memory_space<vmem>>, vector<1x18x12xbf16>
    %10 = vector.shape_cast %9 : vector<1x18x12xbf16> to vector<18x12xbf16>
    %c1_13 = arith.constant 1 : index
    %c0_14 = arith.constant 0 : index
    %c0_15 = arith.constant 0 : index
    %11 = vector.load %arg3[%c1_13, %c0_14, %c0_15] : memref<2x18x12xbf16, #tpu.memory_space<vmem>>, vector<1x18x12xbf16>
    %12 = vector.shape_cast %11 : vector<1x18x12xbf16> to vector<18x12xbf16>
    %c0_16 = arith.constant 0 : index
    %c0_17 = arith.constant 0 : index
    %c0_18 = arith.constant 0 : index
    %13 = vector.load %arg7[%c0_16, %c0_17, %c0_18] : memref<2x8x64xf32, #tpu.memory_space<vmem>>, vector<1x1x32xf32>
    %14 = vector.shape_cast %13 : vector<1x1x32xf32> to vector<1x32xf32>
    %c0_19 = arith.constant 0 : index
    %c1_20 = arith.constant 1 : index
    %c0_21 = arith.constant 0 : index
    %15 = vector.load %arg7[%c0_19, %c1_20, %c0_21] : memref<2x8x64xf32, #tpu.memory_space<vmem>>, vector<1x1x32xf32>
    %16 = vector.shape_cast %15 : vector<1x1x32xf32> to vector<1x32xf32>
    %c0_22 = arith.constant 0 : index
    %c2 = arith.constant 2 : index
    %c0_23 = arith.constant 0 : index
    %17 = vector.load %arg7[%c0_22, %c2, %c0_23] : memref<2x8x64xf32, #tpu.memory_space<vmem>>, vector<1x1x64xf32>
    %18 = vector.shape_cast %17 : vector<1x1x64xf32> to vector<1x64xf32>
    %c0_24 = arith.constant 0 : index
    %c3 = arith.constant 3 : index
    %c0_25 = arith.constant 0 : index
    %19 = vector.load %arg7[%c0_24, %c3, %c0_25] : memref<2x8x64xf32, #tpu.memory_space<vmem>>, vector<1x1x64xf32>
    %20 = vector.shape_cast %19 : vector<1x1x64xf32> to vector<1x64xf32>
    %c0_26 = arith.constant 0 : index
    %c4 = arith.constant 4 : index
    %c0_27 = arith.constant 0 : index
    %21 = vector.load %arg7[%c0_26, %c4, %c0_27] : memref<2x8x64xf32, #tpu.memory_space<vmem>>, vector<1x1x32xf32>
    %22 = vector.shape_cast %21 : vector<1x1x32xf32> to vector<1x32xf32>
    %c0_28 = arith.constant 0 : index
    %c5 = arith.constant 5 : index
    %c0_29 = arith.constant 0 : index
    %23 = vector.load %arg7[%c0_28, %c5, %c0_29] : memref<2x8x64xf32, #tpu.memory_space<vmem>>, vector<1x1x32xf32>
    %24 = vector.shape_cast %23 : vector<1x1x32xf32> to vector<1x32xf32>
    %c0_30 = arith.constant 0 : index
    %c6 = arith.constant 6 : index
    %c0_31 = arith.constant 0 : index
    %25 = vector.load %arg7[%c0_30, %c6, %c0_31] : memref<2x8x64xf32, #tpu.memory_space<vmem>>, vector<1x1x64xf32>
    %26 = vector.shape_cast %25 : vector<1x1x64xf32> to vector<1x64xf32>
    %c0_32 = arith.constant 0 : index
    %c7 = arith.constant 7 : index
    %c0_33 = arith.constant 0 : index
    %27 = vector.load %arg7[%c0_32, %c7, %c0_33] : memref<2x8x64xf32, #tpu.memory_space<vmem>>, vector<1x1x32xf32>
    %28 = vector.shape_cast %27 : vector<1x1x32xf32> to vector<1x32xf32>
    %cst_34 = arith.constant dense<0.000000e+00> : vector<18xf32>
    %29 = vector.multi_reduction <add>, %4, %cst_34 [1] : vector<18x32xf32> to vector<18xf32>
    %30 = vector.shape_cast %29 : vector<18xf32> to vector<18x1xf32>
    %cst_35 = arith.constant 3.200000e+01 : f32
    %31 = vector.broadcast %cst_35 : f32 to vector<18x1xf32>
    %32 = arith.divf %30, %31 : vector<18x1xf32>
    %33 = arith.mulf %4, %4 : vector<18x32xf32>
    %cst_36 = arith.constant dense<0.000000e+00> : vector<18xf32>
    %34 = vector.multi_reduction <add>, %33, %cst_36 [1] : vector<18x32xf32> to vector<18xf32>
    %35 = vector.shape_cast %34 : vector<18xf32> to vector<18x1xf32>
    %cst_37 = arith.constant 3.200000e+01 : f32
    %36 = vector.broadcast %cst_37 : f32 to vector<18x1xf32>
    %37 = arith.divf %35, %36 : vector<18x1xf32>
    %38 = arith.mulf %32, %32 : vector<18x1xf32>
    %39 = arith.subf %37, %38 : vector<18x1xf32>
    %40 = vector.broadcast %32 : vector<18x1xf32> to vector<18x32xf32>
    %41 = arith.subf %4, %40 : vector<18x32xf32>
    %cst_38 = arith.constant 9.99999997E-7 : f32
    %42 = vector.broadcast %cst_38 : f32 to vector<18x1xf32>
    %43 = arith.addf %39, %42 : vector<18x1xf32>
    %44 = math.rsqrt %43 : vector<18x1xf32>
    %45 = vector.broadcast %44 : vector<18x1xf32> to vector<18x32xf32>
    %46 = arith.mulf %41, %45 : vector<18x32xf32>
    %47 = vector.broadcast %14 : vector<1x32xf32> to vector<18x32xf32>
    %48 = arith.mulf %46, %47 : vector<18x32xf32>
    %49 = vector.broadcast %16 : vector<1x32xf32> to vector<18x32xf32>
    %50 = arith.addf %48, %49 : vector<18x32xf32>
    %51 = arith.truncf %50 : vector<18x32xf32> to vector<18x32xbf16>
    %cst_39 = arith.constant dense<0.000000e+00> : vector<12x32xf32>
    %52 = tpu.matmul %6, %51, %cst_39 {dimension_numbers = #tpu.dot_dimension_numbers<[1], [0], [0], [1], [0, 0, 1, 1], [], []>} : vector<12x18xbf16>, vector<18x32xbf16>, vector<12x32xf32> -> vector<12x32xf32>
    %cst_40 = arith.constant dense<0.000000e+00> : vector<12x32xf32>
    %53 = tpu.matmul %8, %51, %cst_40 {dimension_numbers = #tpu.dot_dimension_numbers<[1], [0], [0], [1], [0, 0, 1, 1], [], []>} : vector<12x18xbf16>, vector<18x32xbf16>, vector<12x32xf32> -> vector<12x32xf32>
    %c0_41 = arith.constant 0 : index
    %c0_42 = arith.constant 0 : index
    %c0_43 = arith.constant 0 : index
    %54 = vector.load %arg4[%c0_41, %c0_42, %c0_43] : memref<8x64x64xbf16, #tpu.memory_space<vmem>>, vector<1x32x64xbf16>
    %55 = vector.shape_cast %54 : vector<1x32x64xbf16> to vector<32x64xbf16>
    %c0_44 = arith.constant 0 : index
    %c32 = arith.constant 32 : index
    %c0_45 = arith.constant 0 : index
    %56 = vector.load %arg4[%c0_44, %c32, %c0_45] : memref<8x64x64xbf16, #tpu.memory_space<vmem>>, vector<1x32x64xbf16>
    %57 = vector.shape_cast %56 : vector<1x32x64xbf16> to vector<32x64xbf16>
    %58 = arith.truncf %52 : vector<12x32xf32> to vector<12x32xbf16>
    %cst_46 = arith.constant dense<0.000000e+00> : vector<12x64xf32>
    %59 = tpu.matmul %58, %55, %cst_46 {dimension_numbers = #tpu.dot_dimension_numbers<[1], [0], [0], [1], [0, 0, 1, 1], [], []>} : vector<12x32xbf16>, vector<32x64xbf16>, vector<12x64xf32> -> vector<12x64xf32>
    %60 = arith.truncf %53 : vector<12x32xf32> to vector<12x32xbf16>
    %cst_47 = arith.constant dense<0.000000e+00> : vector<12x64xf32>
    %61 = tpu.matmul %60, %57, %cst_47 {dimension_numbers = #tpu.dot_dimension_numbers<[1], [0], [0], [1], [0, 0, 1, 1], [], []>} : vector<12x32xbf16>, vector<32x64xbf16>, vector<12x64xf32> -> vector<12x64xf32>
    %62 = arith.addf %59, %61 : vector<12x64xf32>
    %63 = vector.broadcast %18 : vector<1x64xf32> to vector<12x64xf32>
    %64 = arith.addf %62, %63 : vector<12x64xf32>
    %cst_48 = arith.constant 0.000000e+00 : f32
    %65 = vector.broadcast %cst_48 : f32 to vector<12x64xf32>
    %66 = arith.maximumf %64, %65 : vector<12x64xf32>
    %67 = arith.truncf %66 : vector<12x64xf32> to vector<12x64xbf16>
    %c1_49 = arith.constant 1 : index
    %c0_50 = arith.constant 0 : index
    %c0_51 = arith.constant 0 : index
    %68 = vector.load %arg4[%c1_49, %c0_50, %c0_51] : memref<8x64x64xbf16, #tpu.memory_space<vmem>>, vector<1x64x64xbf16>
    %69 = vector.shape_cast %68 : vector<1x64x64xbf16> to vector<64x64xbf16>
    %cst_52 = arith.constant dense<0.000000e+00> : vector<12x64xf32>
    %70 = tpu.matmul %67, %69, %cst_52 {dimension_numbers = #tpu.dot_dimension_numbers<[1], [0], [0], [1], [0, 0, 1, 1], [], []>} : vector<12x64xbf16>, vector<64x64xbf16>, vector<12x64xf32> -> vector<12x64xf32>
    %71 = vector.broadcast %20 : vector<1x64xf32> to vector<12x64xf32>
    %72 = arith.addf %70, %71 : vector<12x64xf32>
    %cst_53 = arith.constant 0.00999999977 : f32
    %73 = vector.broadcast %cst_53 : f32 to vector<12x64xf32>
    %74 = arith.cmpf ogt, %72, %73 : vector<12x64xf32>
    %cst_54 = arith.constant 0.00999999977 : f32
    %75 = vector.broadcast %cst_54 : f32 to vector<12x64xf32>
    %76 = arith.subf %72, %75 : vector<12x64xf32>
    %cst_55 = arith.constant -0.00999999977 : f32
    %77 = vector.broadcast %cst_55 : f32 to vector<12x64xf32>
    %78 = arith.cmpf olt, %72, %77 : vector<12x64xf32>
    %cst_56 = arith.constant 0.00999999977 : f32
    %79 = vector.broadcast %cst_56 : f32 to vector<12x64xf32>
    %80 = arith.addf %72, %79 : vector<12x64xf32>
    %cst_57 = arith.constant 0.000000e+00 : f32
    %81 = vector.broadcast %cst_57 : f32 to vector<12x64xf32>
    %82 = arith.select %78, %80, %81 : vector<12x64xi1>, vector<12x64xf32>
    %83 = arith.select %74, %76, %82 : vector<12x64xi1>, vector<12x64xf32>
    %84 = vector.extract_strided_slice %83 {offsets = [0, 0], sizes = [12, 32], strides = [1, 1]} : vector<12x64xf32> to vector<12x32xf32>
    %85 = arith.truncf %84 : vector<12x32xf32> to vector<12x32xbf16>
    %86 = vector.extract_strided_slice %83 {offsets = [0, 32], sizes = [12, 32], strides = [1, 1]} : vector<12x64xf32> to vector<12x32xf32>
    %87 = arith.truncf %86 : vector<12x32xf32> to vector<12x32xbf16>
    %cst_58 = arith.constant dense<0.000000e+00> : vector<18x32xf32>
    %88 = tpu.matmul %10, %85, %cst_58 {dimension_numbers = #tpu.dot_dimension_numbers<[1], [0], [0], [1], [0, 0, 1, 1], [], []>} : vector<18x12xbf16>, vector<12x32xbf16>, vector<18x32xf32> -> vector<18x32xf32>
    %cst_59 = arith.constant dense<0.000000e+00> : vector<18x32xf32>
    %89 = tpu.matmul %12, %87, %cst_59 {dimension_numbers = #tpu.dot_dimension_numbers<[1], [0], [0], [1], [0, 0, 1, 1], [], []>} : vector<18x12xbf16>, vector<12x32xbf16>, vector<18x32xf32> -> vector<18x32xf32>
    %90 = arith.addf %88, %89 : vector<18x32xf32>
    %91 = arith.addf %90, %50 : vector<18x32xf32>
    %92 = arith.addf %91, %4 : vector<18x32xf32>
    %cst_60 = arith.constant dense<0.000000e+00> : vector<18xf32>
    %93 = vector.multi_reduction <add>, %92, %cst_60 [1] : vector<18x32xf32> to vector<18xf32>
    %94 = vector.shape_cast %93 : vector<18xf32> to vector<18x1xf32>
    %cst_61 = arith.constant 3.200000e+01 : f32
    %95 = vector.broadcast %cst_61 : f32 to vector<18x1xf32>
    %96 = arith.divf %94, %95 : vector<18x1xf32>
    %97 = arith.mulf %92, %92 : vector<18x32xf32>
    %cst_62 = arith.constant dense<0.000000e+00> : vector<18xf32>
    %98 = vector.multi_reduction <add>, %97, %cst_62 [1] : vector<18x32xf32> to vector<18xf32>
    %99 = vector.shape_cast %98 : vector<18xf32> to vector<18x1xf32>
    %cst_63 = arith.constant 3.200000e+01 : f32
    %100 = vector.broadcast %cst_63 : f32 to vector<18x1xf32>
    %101 = arith.divf %99, %100 : vector<18x1xf32>
    %102 = arith.mulf %96, %96 : vector<18x1xf32>
    %103 = arith.subf %101, %102 : vector<18x1xf32>
    %104 = vector.broadcast %96 : vector<18x1xf32> to vector<18x32xf32>
    %105 = arith.subf %92, %104 : vector<18x32xf32>
    %cst_64 = arith.constant 9.99999997E-7 : f32
    %106 = vector.broadcast %cst_64 : f32 to vector<18x1xf32>
    %107 = arith.addf %103, %106 : vector<18x1xf32>
    %108 = math.rsqrt %107 : vector<18x1xf32>
    %109 = vector.broadcast %108 : vector<18x1xf32> to vector<18x32xf32>
    %110 = arith.mulf %105, %109 : vector<18x32xf32>
    %111 = vector.broadcast %22 : vector<1x32xf32> to vector<18x32xf32>
    %112 = arith.mulf %110, %111 : vector<18x32xf32>
    %113 = vector.broadcast %24 : vector<1x32xf32> to vector<18x32xf32>
    %114 = arith.addf %112, %113 : vector<18x32xf32>
    %c2_65 = arith.constant 2 : index
    %c0_66 = arith.constant 0 : index
    %c0_67 = arith.constant 0 : index
    %115 = vector.load %arg4[%c2_65, %c0_66, %c0_67] : memref<8x64x64xbf16, #tpu.memory_space<vmem>>, vector<1x32x64xbf16>
    %116 = vector.shape_cast %115 : vector<1x32x64xbf16> to vector<32x64xbf16>
    %117 = arith.truncf %114 : vector<18x32xf32> to vector<18x32xbf16>
    %cst_68 = arith.constant dense<0.000000e+00> : vector<18x64xf32>
    %118 = tpu.matmul %117, %116, %cst_68 {dimension_numbers = #tpu.dot_dimension_numbers<[1], [0], [0], [1], [0, 0, 1, 1], [], []>} : vector<18x32xbf16>, vector<32x64xbf16>, vector<18x64xf32> -> vector<18x64xf32>
    %119 = vector.broadcast %26 : vector<1x64xf32> to vector<18x64xf32>
    %120 = arith.addf %118, %119 : vector<18x64xf32>
    %cst_69 = arith.constant 5.000000e-01 : f32
    %121 = vector.broadcast %cst_69 : f32 to vector<18x64xf32>
    %122 = arith.mulf %121, %120 : vector<18x64xf32>
    %cst_70 = arith.constant 4.471500e-02 : f32
    %123 = vector.broadcast %cst_70 : f32 to vector<18x64xf32>
    %124 = arith.mulf %123, %120 : vector<18x64xf32>
    %125 = arith.mulf %124, %120 : vector<18x64xf32>
    %126 = arith.mulf %125, %120 : vector<18x64xf32>
    %127 = arith.addf %120, %126 : vector<18x64xf32>
    %cst_71 = arith.constant 0.797884583 : f32
    %128 = vector.broadcast %cst_71 : f32 to vector<18x64xf32>
    %129 = arith.mulf %128, %127 : vector<18x64xf32>
    %130 = math.tanh %129 : vector<18x64xf32>
    %cst_72 = arith.constant 1.000000e+00 : f32
    %131 = vector.broadcast %cst_72 : f32 to vector<18x64xf32>
    %132 = arith.addf %131, %130 : vector<18x64xf32>
    %133 = arith.mulf %122, %132 : vector<18x64xf32>
    %c3_73 = arith.constant 3 : index
    %c0_74 = arith.constant 0 : index
    %c0_75 = arith.constant 0 : index
    %134 = vector.load %arg4[%c3_73, %c0_74, %c0_75] : memref<8x64x64xbf16, #tpu.memory_space<vmem>>, vector<1x64x32xbf16>
    %135 = vector.shape_cast %134 : vector<1x64x32xbf16> to vector<64x32xbf16>
    %136 = arith.truncf %133 : vector<18x64xf32> to vector<18x64xbf16>
    %cst_76 = arith.constant dense<0.000000e+00> : vector<18x32xf32>
    %137 = tpu.matmul %136, %135, %cst_76 {dimension_numbers = #tpu.dot_dimension_numbers<[1], [0], [0], [1], [0, 0, 1, 1], [], []>} : vector<18x64xbf16>, vector<64x32xbf16>, vector<18x32xf32> -> vector<18x32xf32>
    %138 = vector.broadcast %28 : vector<1x32xf32> to vector<18x32xf32>
    %139 = arith.addf %137, %138 : vector<18x32xf32>
    %140 = arith.addf %139, %92 : vector<18x32xf32>
    %c1_77 = arith.constant 1 : index
    %c0_78 = arith.constant 0 : index
    %c0_79 = arith.constant 0 : index
    %141 = vector.load %arg7[%c1_77, %c0_78, %c0_79] : memref<2x8x64xf32, #tpu.memory_space<vmem>>, vector<1x1x32xf32>
    %142 = vector.shape_cast %141 : vector<1x1x32xf32> to vector<1x32xf32>
    %c1_80 = arith.constant 1 : index
    %c1_81 = arith.constant 1 : index
    %c0_82 = arith.constant 0 : index
    %143 = vector.load %arg7[%c1_80, %c1_81, %c0_82] : memref<2x8x64xf32, #tpu.memory_space<vmem>>, vector<1x1x32xf32>
    %144 = vector.shape_cast %143 : vector<1x1x32xf32> to vector<1x32xf32>
    %c1_83 = arith.constant 1 : index
    %c2_84 = arith.constant 2 : index
    %c0_85 = arith.constant 0 : index
    %145 = vector.load %arg7[%c1_83, %c2_84, %c0_85] : memref<2x8x64xf32, #tpu.memory_space<vmem>>, vector<1x1x64xf32>
    %146 = vector.shape_cast %145 : vector<1x1x64xf32> to vector<1x64xf32>
    %c1_86 = arith.constant 1 : index
    %c3_87 = arith.constant 3 : index
    %c0_88 = arith.constant 0 : index
    %147 = vector.load %arg7[%c1_86, %c3_87, %c0_88] : memref<2x8x64xf32, #tpu.memory_space<vmem>>, vector<1x1x64xf32>
    %148 = vector.shape_cast %147 : vector<1x1x64xf32> to vector<1x64xf32>
    %c1_89 = arith.constant 1 : index
    %c4_90 = arith.constant 4 : index
    %c0_91 = arith.constant 0 : index
    %149 = vector.load %arg7[%c1_89, %c4_90, %c0_91] : memref<2x8x64xf32, #tpu.memory_space<vmem>>, vector<1x1x32xf32>
    %150 = vector.shape_cast %149 : vector<1x1x32xf32> to vector<1x32xf32>
    %c1_92 = arith.constant 1 : index
    %c5_93 = arith.constant 5 : index
    %c0_94 = arith.constant 0 : index
    %151 = vector.load %arg7[%c1_92, %c5_93, %c0_94] : memref<2x8x64xf32, #tpu.memory_space<vmem>>, vector<1x1x32xf32>
    %152 = vector.shape_cast %151 : vector<1x1x32xf32> to vector<1x32xf32>
    %c1_95 = arith.constant 1 : index
    %c6_96 = arith.constant 6 : index
    %c0_97 = arith.constant 0 : index
    %153 = vector.load %arg7[%c1_95, %c6_96, %c0_97] : memref<2x8x64xf32, #tpu.memory_space<vmem>>, vector<1x1x64xf32>
    %154 = vector.shape_cast %153 : vector<1x1x64xf32> to vector<1x64xf32>
    %c1_98 = arith.constant 1 : index
    %c7_99 = arith.constant 7 : index
    %c0_100 = arith.constant 0 : index
    %155 = vector.load %arg7[%c1_98, %c7_99, %c0_100] : memref<2x8x64xf32, #tpu.memory_space<vmem>>, vector<1x1x32xf32>
    %156 = vector.shape_cast %155 : vector<1x1x32xf32> to vector<1x32xf32>
    %cst_101 = arith.constant dense<0.000000e+00> : vector<18xf32>
    %157 = vector.multi_reduction <add>, %140, %cst_101 [1] : vector<18x32xf32> to vector<18xf32>
    %158 = vector.shape_cast %157 : vector<18xf32> to vector<18x1xf32>
    %cst_102 = arith.constant 3.200000e+01 : f32
    %159 = vector.broadcast %cst_102 : f32 to vector<18x1xf32>
    %160 = arith.divf %158, %159 : vector<18x1xf32>
    %161 = arith.mulf %140, %140 : vector<18x32xf32>
    %cst_103 = arith.constant dense<0.000000e+00> : vector<18xf32>
    %162 = vector.multi_reduction <add>, %161, %cst_103 [1] : vector<18x32xf32> to vector<18xf32>
    %163 = vector.shape_cast %162 : vector<18xf32> to vector<18x1xf32>
    %cst_104 = arith.constant 3.200000e+01 : f32
    %164 = vector.broadcast %cst_104 : f32 to vector<18x1xf32>
    %165 = arith.divf %163, %164 : vector<18x1xf32>
    %166 = arith.mulf %160, %160 : vector<18x1xf32>
    %167 = arith.subf %165, %166 : vector<18x1xf32>
    %168 = vector.broadcast %160 : vector<18x1xf32> to vector<18x32xf32>
    %169 = arith.subf %140, %168 : vector<18x32xf32>
    %cst_105 = arith.constant 9.99999997E-7 : f32
    %170 = vector.broadcast %cst_105 : f32 to vector<18x1xf32>
    %171 = arith.addf %167, %170 : vector<18x1xf32>
    %172 = math.rsqrt %171 : vector<18x1xf32>
    %173 = vector.broadcast %172 : vector<18x1xf32> to vector<18x32xf32>
    %174 = arith.mulf %169, %173 : vector<18x32xf32>
    %175 = vector.broadcast %142 : vector<1x32xf32> to vector<18x32xf32>
    %176 = arith.mulf %174, %175 : vector<18x32xf32>
    %177 = vector.broadcast %144 : vector<1x32xf32> to vector<18x32xf32>
    %178 = arith.addf %176, %177 : vector<18x32xf32>
    %179 = arith.truncf %178 : vector<18x32xf32> to vector<18x32xbf16>
    %cst_106 = arith.constant dense<0.000000e+00> : vector<12x32xf32>
    %180 = tpu.matmul %6, %179, %cst_106 {dimension_numbers = #tpu.dot_dimension_numbers<[1], [0], [0], [1], [0, 0, 1, 1], [], []>} : vector<12x18xbf16>, vector<18x32xbf16>, vector<12x32xf32> -> vector<12x32xf32>
    %cst_107 = arith.constant dense<0.000000e+00> : vector<12x32xf32>
    %181 = tpu.matmul %8, %179, %cst_107 {dimension_numbers = #tpu.dot_dimension_numbers<[1], [0], [0], [1], [0, 0, 1, 1], [], []>} : vector<12x18xbf16>, vector<18x32xbf16>, vector<12x32xf32> -> vector<12x32xf32>
    %c4_108 = arith.constant 4 : index
    %c0_109 = arith.constant 0 : index
    %c0_110 = arith.constant 0 : index
    %182 = vector.load %arg4[%c4_108, %c0_109, %c0_110] : memref<8x64x64xbf16, #tpu.memory_space<vmem>>, vector<1x32x64xbf16>
    %183 = vector.shape_cast %182 : vector<1x32x64xbf16> to vector<32x64xbf16>
    %c4_111 = arith.constant 4 : index
    %c32_112 = arith.constant 32 : index
    %c0_113 = arith.constant 0 : index
    %184 = vector.load %arg4[%c4_111, %c32_112, %c0_113] : memref<8x64x64xbf16, #tpu.memory_space<vmem>>, vector<1x32x64xbf16>
    %185 = vector.shape_cast %184 : vector<1x32x64xbf16> to vector<32x64xbf16>
    %186 = arith.truncf %180 : vector<12x32xf32> to vector<12x32xbf16>
    %cst_114 = arith.constant dense<0.000000e+00> : vector<12x64xf32>
    %187 = tpu.matmul %186, %183, %cst_114 {dimension_numbers = #tpu.dot_dimension_numbers<[1], [0], [0], [1], [0, 0, 1, 1], [], []>} : vector<12x32xbf16>, vector<32x64xbf16>, vector<12x64xf32> -> vector<12x64xf32>
    %188 = arith.truncf %181 : vector<12x32xf32> to vector<12x32xbf16>
    %cst_115 = arith.constant dense<0.000000e+00> : vector<12x64xf32>
    %189 = tpu.matmul %188, %185, %cst_115 {dimension_numbers = #tpu.dot_dimension_numbers<[1], [0], [0], [1], [0, 0, 1, 1], [], []>} : vector<12x32xbf16>, vector<32x64xbf16>, vector<12x64xf32> -> vector<12x64xf32>
    %190 = arith.addf %187, %189 : vector<12x64xf32>
    %191 = vector.broadcast %146 : vector<1x64xf32> to vector<12x64xf32>
    %192 = arith.addf %190, %191 : vector<12x64xf32>
    %cst_116 = arith.constant 0.000000e+00 : f32
    %193 = vector.broadcast %cst_116 : f32 to vector<12x64xf32>
    %194 = arith.maximumf %192, %193 : vector<12x64xf32>
    %195 = arith.truncf %194 : vector<12x64xf32> to vector<12x64xbf16>
    %c5_117 = arith.constant 5 : index
    %c0_118 = arith.constant 0 : index
    %c0_119 = arith.constant 0 : index
    %196 = vector.load %arg4[%c5_117, %c0_118, %c0_119] : memref<8x64x64xbf16, #tpu.memory_space<vmem>>, vector<1x64x64xbf16>
    %197 = vector.shape_cast %196 : vector<1x64x64xbf16> to vector<64x64xbf16>
    %cst_120 = arith.constant dense<0.000000e+00> : vector<12x64xf32>
    %198 = tpu.matmul %195, %197, %cst_120 {dimension_numbers = #tpu.dot_dimension_numbers<[1], [0], [0], [1], [0, 0, 1, 1], [], []>} : vector<12x64xbf16>, vector<64x64xbf16>, vector<12x64xf32> -> vector<12x64xf32>
    %199 = vector.broadcast %148 : vector<1x64xf32> to vector<12x64xf32>
    %200 = arith.addf %198, %199 : vector<12x64xf32>
    %cst_121 = arith.constant 0.00999999977 : f32
    %201 = vector.broadcast %cst_121 : f32 to vector<12x64xf32>
    %202 = arith.cmpf ogt, %200, %201 : vector<12x64xf32>
    %cst_122 = arith.constant 0.00999999977 : f32
    %203 = vector.broadcast %cst_122 : f32 to vector<12x64xf32>
    %204 = arith.subf %200, %203 : vector<12x64xf32>
    %cst_123 = arith.constant -0.00999999977 : f32
    %205 = vector.broadcast %cst_123 : f32 to vector<12x64xf32>
    %206 = arith.cmpf olt, %200, %205 : vector<12x64xf32>
    %cst_124 = arith.constant 0.00999999977 : f32
    %207 = vector.broadcast %cst_124 : f32 to vector<12x64xf32>
    %208 = arith.addf %200, %207 : vector<12x64xf32>
    %cst_125 = arith.constant 0.000000e+00 : f32
    %209 = vector.broadcast %cst_125 : f32 to vector<12x64xf32>
    %210 = arith.select %206, %208, %209 : vector<12x64xi1>, vector<12x64xf32>
    %211 = arith.select %202, %204, %210 : vector<12x64xi1>, vector<12x64xf32>
    %212 = vector.extract_strided_slice %211 {offsets = [0, 0], sizes = [12, 32], strides = [1, 1]} : vector<12x64xf32> to vector<12x32xf32>
    %213 = arith.truncf %212 : vector<12x32xf32> to vector<12x32xbf16>
    %214 = vector.extract_strided_slice %211 {offsets = [0, 32], sizes = [12, 32], strides = [1, 1]} : vector<12x64xf32> to vector<12x32xf32>
    %215 = arith.truncf %214 : vector<12x32xf32> to vector<12x32xbf16>
    %cst_126 = arith.constant dense<0.000000e+00> : vector<18x32xf32>
    %216 = tpu.matmul %10, %213, %cst_126 {dimension_numbers = #tpu.dot_dimension_numbers<[1], [0], [0], [1], [0, 0, 1, 1], [], []>} : vector<18x12xbf16>, vector<12x32xbf16>, vector<18x32xf32> -> vector<18x32xf32>
    %cst_127 = arith.constant dense<0.000000e+00> : vector<18x32xf32>
    %217 = tpu.matmul %12, %215, %cst_127 {dimension_numbers = #tpu.dot_dimension_numbers<[1], [0], [0], [1], [0, 0, 1, 1], [], []>} : vector<18x12xbf16>, vector<12x32xbf16>, vector<18x32xf32> -> vector<18x32xf32>
    %218 = arith.addf %216, %217 : vector<18x32xf32>
    %219 = arith.addf %218, %178 : vector<18x32xf32>
    %220 = arith.addf %219, %140 : vector<18x32xf32>
    %cst_128 = arith.constant dense<0.000000e+00> : vector<18xf32>
    %221 = vector.multi_reduction <add>, %220, %cst_128 [1] : vector<18x32xf32> to vector<18xf32>
    %222 = vector.shape_cast %221 : vector<18xf32> to vector<18x1xf32>
    %cst_129 = arith.constant 3.200000e+01 : f32
    %223 = vector.broadcast %cst_129 : f32 to vector<18x1xf32>
    %224 = arith.divf %222, %223 : vector<18x1xf32>
    %225 = arith.mulf %220, %220 : vector<18x32xf32>
    %cst_130 = arith.constant dense<0.000000e+00> : vector<18xf32>
    %226 = vector.multi_reduction <add>, %225, %cst_130 [1] : vector<18x32xf32> to vector<18xf32>
    %227 = vector.shape_cast %226 : vector<18xf32> to vector<18x1xf32>
    %cst_131 = arith.constant 3.200000e+01 : f32
    %228 = vector.broadcast %cst_131 : f32 to vector<18x1xf32>
    %229 = arith.divf %227, %228 : vector<18x1xf32>
    %230 = arith.mulf %224, %224 : vector<18x1xf32>
    %231 = arith.subf %229, %230 : vector<18x1xf32>
    %232 = vector.broadcast %224 : vector<18x1xf32> to vector<18x32xf32>
    %233 = arith.subf %220, %232 : vector<18x32xf32>
    %cst_132 = arith.constant 9.99999997E-7 : f32
    %234 = vector.broadcast %cst_132 : f32 to vector<18x1xf32>
    %235 = arith.addf %231, %234 : vector<18x1xf32>
    %236 = math.rsqrt %235 : vector<18x1xf32>
    %237 = vector.broadcast %236 : vector<18x1xf32> to vector<18x32xf32>
    %238 = arith.mulf %233, %237 : vector<18x32xf32>
    %239 = vector.broadcast %150 : vector<1x32xf32> to vector<18x32xf32>
    %240 = arith.mulf %238, %239 : vector<18x32xf32>
    %241 = vector.broadcast %152 : vector<1x32xf32> to vector<18x32xf32>
    %242 = arith.addf %240, %241 : vector<18x32xf32>
    %c6_133 = arith.constant 6 : index
    %c0_134 = arith.constant 0 : index
    %c0_135 = arith.constant 0 : index
    %243 = vector.load %arg4[%c6_133, %c0_134, %c0_135] : memref<8x64x64xbf16, #tpu.memory_space<vmem>>, vector<1x32x64xbf16>
    %244 = vector.shape_cast %243 : vector<1x32x64xbf16> to vector<32x64xbf16>
    %245 = arith.truncf %242 : vector<18x32xf32> to vector<18x32xbf16>
    %cst_136 = arith.constant dense<0.000000e+00> : vector<18x64xf32>
    %246 = tpu.matmul %245, %244, %cst_136 {dimension_numbers = #tpu.dot_dimension_numbers<[1], [0], [0], [1], [0, 0, 1, 1], [], []>} : vector<18x32xbf16>, vector<32x64xbf16>, vector<18x64xf32> -> vector<18x64xf32>
    %247 = vector.broadcast %154 : vector<1x64xf32> to vector<18x64xf32>
    %248 = arith.addf %246, %247 : vector<18x64xf32>
    %cst_137 = arith.constant 5.000000e-01 : f32
    %249 = vector.broadcast %cst_137 : f32 to vector<18x64xf32>
    %250 = arith.mulf %249, %248 : vector<18x64xf32>
    %cst_138 = arith.constant 4.471500e-02 : f32
    %251 = vector.broadcast %cst_138 : f32 to vector<18x64xf32>
    %252 = arith.mulf %251, %248 : vector<18x64xf32>
    %253 = arith.mulf %252, %248 : vector<18x64xf32>
    %254 = arith.mulf %253, %248 : vector<18x64xf32>
    %255 = arith.addf %248, %254 : vector<18x64xf32>
    %cst_139 = arith.constant 0.797884583 : f32
    %256 = vector.broadcast %cst_139 : f32 to vector<18x64xf32>
    %257 = arith.mulf %256, %255 : vector<18x64xf32>
    %258 = math.tanh %257 : vector<18x64xf32>
    %cst_140 = arith.constant 1.000000e+00 : f32
    %259 = vector.broadcast %cst_140 : f32 to vector<18x64xf32>
    %260 = arith.addf %259, %258 : vector<18x64xf32>
    %261 = arith.mulf %250, %260 : vector<18x64xf32>
    %c7_141 = arith.constant 7 : index
    %c0_142 = arith.constant 0 : index
    %c0_143 = arith.constant 0 : index
    %262 = vector.load %arg4[%c7_141, %c0_142, %c0_143] : memref<8x64x64xbf16, #tpu.memory_space<vmem>>, vector<1x64x32xbf16>
    %263 = vector.shape_cast %262 : vector<1x64x32xbf16> to vector<64x32xbf16>
    %264 = arith.truncf %261 : vector<18x64xf32> to vector<18x64xbf16>
    %cst_144 = arith.constant dense<0.000000e+00> : vector<18x32xf32>
    %265 = tpu.matmul %264, %263, %cst_144 {dimension_numbers = #tpu.dot_dimension_numbers<[1], [0], [0], [1], [0, 0, 1, 1], [], []>} : vector<18x64xbf16>, vector<64x32xbf16>, vector<18x32xf32> -> vector<18x32xf32>
    %266 = vector.broadcast %156 : vector<1x32xf32> to vector<18x32xf32>
    %267 = arith.addf %265, %266 : vector<18x32xf32>
    %268 = arith.addf %267, %220 : vector<18x32xf32>
    %269 = arith.truncf %268 : vector<18x32xf32> to vector<18x32xbf16>
    %c0_145 = arith.constant 0 : index
    %c0_146 = arith.constant 0 : index
    %270 = vector.load %arg6[%c0_145, %c0_146] : memref<32x256xbf16, #tpu.memory_space<vmem>>, vector<32x256xbf16>
    %cst_147 = arith.constant dense<0.000000e+00> : vector<18x256xf32>
    %271 = tpu.matmul %269, %270, %cst_147 {dimension_numbers = #tpu.dot_dimension_numbers<[1], [0], [0], [1], [0, 0, 1, 1], [], []>} : vector<18x32xbf16>, vector<32x256xbf16>, vector<18x256xf32> -> vector<18x256xf32>
    %c0_148 = arith.constant 0 : index
    %c0_149 = arith.constant 0 : index
    %272 = vector.load %arg8[%c0_148, %c0_149] : memref<18x256xf32, #tpu.memory_space<vmem>>, vector<18x256xf32>
    tpu.vector_store %arg8[%c0_148, %c0_149], %271 {strides = array<i32>} : memref<18x256xf32, #tpu.memory_space<vmem>>, vector<18x256xf32>,
    return
  }
}

</mosaic_0001>

<bundles_post_ra>
// kernel: forward.1
= control target key start
LH: loop header
LB: loop body
LE: loop exit
PB: predicated region body
PF: predicated region fallthrough
CT: control target
= control target key end

     0   :  { %vm249_vm0 = vcmask 261120   ;;  %vm256_vm1 = vcmask 254976   ;;  %v2404_v47 = vmov 0.0   ;;  %vm2405_vm2 = vmmov 0   ;;  %s2406_s28 = smov 96   ;;  %s2941_s5 = inlined_call_operand.vmem [shape: bf16[256,32], index: 5, kind: input, shape index: {}]   ;;  %s2942_s0 = inlined_call_operand.vmem [shape: bf16[18,256], index: 0, kind: input, shape index: {}]   ;;  %s2943_s1 = inlined_call_operand.vmem [shape: f32[18,32], index: 1, kind: input, shape index: {}]   ;;  %s2944_s2 = inlined_call_operand.vmem [shape: bf16[2,12,18], index: 2, kind: input, shape index: {}]   ;;  %s2945_s7 = inlined_call_operand.vmem [shape: f32[2,8,64], index: 7, kind: input, shape index: {}]   ;;  %s2946_s4 = inlined_call_operand.vmem [shape: bf16[8,64,64], index: 4, kind: input, shape index: {}]   ;;  %s2947_s3 = inlined_call_operand.vmem [shape: bf16[2,18,12], index: 3, kind: input, shape index: {}]   ;;  %s2948_s6 = inlined_call_operand.vmem [shape: bf16[32,256], index: 6, kind: input, shape index: {}]   ;;  %s2949_s8 = inlined_call_operand.vmem [shape: f32[18,256], index: 8, kind: output, shape index: {}]  }
   0x1   :  { %v2307_v0 = vld [vmem:[%s2941_s5 + $0x40] sm:$0xff]   ;;  %v2309_v2 = vld [vmem:[%s2941_s5 + $0x48] sm:$0xff]   ;;  %v2311_v4 = vld [vmem:[%s2941_s5 + $0x50] sm:$0xff]   ;;  %2147 = vmatprep.subr.bf16.mxu1 %v2404_v47  ;;  %2151 = vmatprep.mubr.msk.bf16.mxu1 %vm2405_vm2, %v2404_v47  ;;  %vm322_vm3 = vcmask 1040384   ;;  %vm318_vm4 = vcmask 146432   ;;  %vm584_vm5 = vcmask 523264  }
   0x2   :  { %v2308_v1 = vld [vmem:[%s2941_s5] sm:$0xff]   ;;  %2053 = vmatprep.subr.bf16.mxu0 %v2307_v0  ;;  %v2310_v3 = vld [vmem:[%s2941_s5 + $0x8] sm:$0xff]   ;;  %v2312_v5 = vld [vmem:[%s2941_s5 + $0x10] sm:$0xff]   ;;  %vm653_vm6 = vcmask 97280   ;;  %vm660_vm11 = vcmask 1045504  }
   0x3   :  { %2054 = vmatpush3.bf16.msra.mxu0 %v2308_v1  ;;  %v2313_v6 = vld [vmem:[%s2941_s5 + $0x58] sm:$0xff]   ;;  %v2315_v8 = vld [vmem:[%s2941_s5 + $0x60] sm:$0xff]   ;;  %v2317_v10 = vld [vmem:[%s2941_s5 + $0x68] sm:$0xff]  }
   0x4   :  { %2055 = vmatprep.subr.bf16.mxu0 %v2309_v2  ;;  %v2314_v7 = vld [vmem:[%s2941_s5 + $0x18] sm:$0xff]   ;;  %v2316_v9 = vld [vmem:[%s2941_s5 + $0x20] sm:$0xff]   ;;  %v2318_v12 = vld [vmem:[%s2941_s5 + $0x28] sm:$0xff]  }
   0x5   :  { %v2325_v11 = vld [vmem:[%s2942_s0 + $0x4] ss:$8 sps:$4 sm:$0xff]   ;;  %v2319_v13 = vld [vmem:[%s2941_s5 + $0x70] sm:$0xff]   ;;  %v2321_v15 = vld [vmem:[%s2941_s5 + $0x78] sm:$0xff]  }
   0x6   :  { %213 = vmatprep.mubr.bf16.mxu0 %v2325_v11  ;;  %v2320_v14 = vld [vmem:[%s2941_s5 + $0x30] sm:$0xff]   ;;  %v2322_v16 = vld [vmem:[%s2941_s5 + $0x38] sm:$0xff]   ;;  %v2323_v18 = vld [vmem:[%s2942_s0] ss:$8 sps:$4 sm:$0xff]  }
   0x7   :  { %2056 = vmatpush3.bf16.msra.mxu0 %v2310_v3  ;;  %v32_v17 = vld [vmem:[%s2942_s0 + $0x10] sm:$0x11]  ;;  %v65_v22 = vld [vmem:[%s2943_s1] sm:$0xff]  ;;  %v66_v26 = vld [vmem:[%s2943_s1 + $0x8] sm:$0xff] }
   0x8   :  { %2057 = vmatprep.subr.bf16.mxu0 %v2311_v4  ;;  %v1889_v19 = vcombine.high %v32_v17, %v32_v17  ;;  %v1888_v20 = vcombine.low %v32_v17, %v32_v17  ;;  %v67_v36 = vld [vmem:[%s2943_s1 + $0x10] sm:$0x3] }
   0xb   :  { %2058 = vmatpush3.bf16.msra.mxu0 %v2312_v5 }
   0xc   :  { %2059 = vmatprep.subr.bf16.mxu0 %v2313_v6 }
   0xf   :  { %2060 = vmatpush3.bf16.msra.mxu0 %v2314_v7 }
  0x10   :  { %2061 = vmatprep.subr.bf16.mxu0 %v2315_v8  ;;  %v1911_v8 = vld [vmem:[%s2945_s7] ss:$0 sm:$0xff] }
  0x13   :  { %2062 = vmatpush3.bf16.msra.mxu0 %v2316_v9 }
  0x14   :  { %2063 = vmatprep.subr.bf16.mxu0 %v2317_v10 }
  0x17   :  { %2064 = vmatpush3.bf16.msra.mxu0 %v2318_v12 }
  0x18   :  { %2065 = vmatprep.subr.bf16.mxu0 %v2319_v13  ;;  %v1912_v13 = vld [vmem:[%s2945_s7 + $0x1] ss:$0 sm:$0xff] }
  0x1b   :  { %2066 = vmatpush3.bf16.msra.mxu0 %v2320_v14 }
  0x1c   :  { %2067 = vmatprep.subr.bf16.mxu0 %v2321_v15 }
  0x1f   :  { %2068 = vmatpush3.bf16.msra.mxu0 %v2322_v16 }
  0x20   :  { %2179 = vmatprep.subr.bf16.mxu0 %v2404_v47 }
  0x22   :  { %214 = vmatmul.mubr.bf16.vlgmr.msra.gmra.mrb[0].mxu0 %v2323_v18 }
  0x23   :  { %221 = vmatprep.mubr.bf16.mxu0 %v1889_v19 }
  0x2a   :  { %222 = vmatmul.mubr.bf16.gmra.mrb[4].mxu0 %v1888_v20 }
  0x2b   :  { %2187 = vmatprep.mubr.msk.bf16.mxu0 %vm2405_vm2, %v2404_v47 }
  0xf5   :  { %v2069_v21 = vpop.f32.mrb[0].mxu0 }
  0xf6   :  { %v2070_v23 = vpop.f32.mrb[1].mxu0 }
  0xf7   :  { %v2071_v24 = vadd.f32 %v2070_v23, %v2069_v21  ;;  %v2072_v25 = vpop.f32.mrb[2].mxu0 }
  0xf8   :  { %v2073_v27 = vpop.f32.mrb[3].mxu0 }
  0xf9   :  { %v2516_v28 = vadd.f32 %v2071_v24, %v65_v22  ;;  %v2074_v29 = vadd.f32 %v2073_v27, %v2072_v25  ;;  %v2570_v25 = vld [vmem:[%s2944_s2] sm:$0x3f]   ;;  %v2330_v27 = vld [vmem:[%s2946_s4 + $0x10] sm:$0xff]  }
  0xfb   :  { %v2518_v30 = vadd.f32 %v2074_v29, %v66_v26  ;;  %v250_v31 = vsel %vm249_vm0, %v2516_v28, 0.0  ;;  %v264_v32 = vmul.f32 %v2516_v28, %v2516_v28  ;;  %v2581_v26 = vld [vmem:[%s2944_s2 + $0x8] sm:$0x3f]   ;;  %v2331_v29 = vld [vmem:[%s2946_s4 + $0x18] sm:$0xff]  }
  0xfc   :  { %251 = vadd.xlane.f32.xlu0 %v250_v31 }
  0xfd   :  { %v2075_v33 = vpop.f32.mrb[4].mxu0  ;;  %v267_v34 = vsel %vm249_vm0, %v264_v32, 0.0  ;;  %v265_v35 = vmul.f32 %v2518_v30, %v2518_v30  ;;  %v253_v40 = vsel %vm249_vm0, %v2518_v30, 0.0 }
  0xfe   :  { %v2076_v37 = vpop.f32.mrb[5].mxu0  ;;  %268 = vadd.xlane.f32.xlu1 %v267_v34 }
  0xff   :  { %v2077_v38 = vadd.f32 %v2076_v37, %v2075_v33  ;;  %v2078_v39 = vpop.f32.mrb[6].mxu0  ;;  %v270_v43 = vsel %vm249_vm0, %v265_v35, 0.0 }
 0x100   :  { %v2079_v41 = vpop.f32.mrb[7].mxu0  ;;  %254 = vadd.xlane.f32.xlu0 %v253_v40  ;;  %v2332_v39 = vld [vmem:[%s2946_s4] sm:$0xff]  }
 0x101   :  { %v2532_v42 = vadd.f32 %v2077_v38, %v67_v36 }
 0x102   :  { %271 = vadd.xlane.f32.xlu1 %v270_v43  ;;  %v2333_v43 = vld [vmem:[%s2946_s4 + $0x8] sm:$0xff]  }
 0x103   :  { %v257_v44 = vsel %vm256_vm1, %v2532_v42, 0.0  ;;  %v266_v45 = vmul.f32 %v2532_v42, %v2532_v42 }
 0x104   :  { %258 = vadd.xlane.f32.xlu0 %v257_v44  ;;  %v2334_v44 = vld [vmem:[%s2946_s4 + $0x20] sm:$0xff]  }
 0x105   :  { %v273_v46 = vsel %vm256_vm1, %v266_v45, 0.0  ;;  %2180 = vmatpush3.bf16.msra.mxu0 %v2334_v44  ;;  %v2335_v45 = vld [vmem:[%s2946_s4 + $0x28] sm:$0xff]  }
 0x106   :  { %274 = vadd.xlane.f32.xlu1 %v273_v46  ;;  %2181 = vmatprep.subr.bf16.mxu0 %v2404_v47  ;;  %v2336_v46 = vld [vmem:[%s2946_s4 + $0x30] sm:$0xff]  }
 0x109   :  { %2182 = vmatpush3.bf16.msra.mxu0 %v2335_v45 }
 0x10a   :  { %2183 = vmatprep.subr.bf16.mxu0 %v2404_v47 }
 0x10d   :  { %2184 = vmatpush3.bf16.msra.mxu0 %v2336_v46 }
 0x10e   :  { %2185 = vmatprep.subr.bf16.mxu0 %v2404_v47 }
 0x189   :  { %v252_v48 = vpop.xlane.xlu0 %251 }
 0x18a   :  { %v261_v49 = vmul.f32 0.03125, %v252_v48  ;;  %v2337_v48 = vld [vmem:[%s2946_s4 + $0x38] sm:$0xff]  }
 0x18b   :  { %v269_v50 = vpop.xlane.xlu1 %268  ;;  %2186 = vmatpush3.bf16.msra.mxu0 %v2337_v48 }
 0x18c   :  { %v279_v51 = vmul.f32 %v261_v49, %v261_v49  ;;  %v276_v52 = vmul.f32 0.03125, %v269_v50  ;;  %v285_v5 = vsub.f32 %v2516_v28, %v261_v49 }
 0x18d   :  { %v255_v53 = vpop.xlane.xlu0 %254 }
 0x18e   :  { %v282_v54 = vsub.f32 %v276_v52, %v279_v51  ;;  %v262_v55 = vmul.f32 0.03125, %v255_v53  ;;  %v1923_v53 = vld [vmem:[%s2945_s7 + $0x2] ss:$0 sm:$0xff] }
 0x18f   :  { %v272_v56 = vpop.xlane.xlu1 %271 }
 0x190   :  { %v288_v57 = vadd.f32 1e-06, %v282_v54  ;;  %v280_v58 = vmul.f32 %v262_v55, %v262_v55  ;;  %v277_v59 = vmul.f32 0.03125, %v272_v56  ;;  %v286_v9 = vsub.f32 %v2518_v30, %v262_v55 }
 0x191   :  { %v259_v60 = vpop.xlane.xlu0 %258 }
 0x192   :  { %2368 = vrsqrt.f32 %v288_v57  ;;  %v283_v61 = vsub.f32 %v277_v59, %v280_v58  ;;  %v263_v62 = vmul.f32 0.03125, %v259_v60 }
 0x193   :  { %v275_v63 = vpop.xlane.xlu1 %274 }
 0x194   :  { %v289_v0 = vadd.f32 1e-06, %v283_v61  ;;  %v281_v1 = vmul.f32 %v263_v62, %v263_v62  ;;  %v278_v2 = vmul.f32 0.03125, %v275_v63  ;;  %v287_v14 = vsub.f32 %v2532_v42, %v263_v62 }
 0x196   :  { %2370 = vrsqrt.f32 %v289_v0  ;;  %v284_v3 = vsub.f32 %v278_v2, %v281_v1  ;;  %v1932_v1 = vld [vmem:[%s2945_s7 + $0x3] ss:$0 sm:$0xff] }
 0x198   :  { %v290_v4 = vadd.f32 1e-06, %v284_v3  ;;  %v2632_v3 = vld [vmem:[%s2947_s3 + $0xc] sm:$0xff]  }
 0x19a   :  { %2372 = vrsqrt.f32 %v290_v4 }
 0x19c   :  { %v2369_v6 = vpop.eup %2368 }
 0x19d   :  { %v294_v7 = vmul.f32 %v2369_v6, %v285_v5 }
 0x19f   :  { %v301_v12 = vmul.f32 %v1911_v8, %v294_v7 }
 0x1a0   :  { %v2371_v10 = vpop.eup %2370 }
 0x1a1   :  { %v295_v11 = vmul.f32 %v2371_v10, %v286_v9  ;;  %v2555_v17 = vadd.f32 %v1912_v13, %v301_v12 }
 0x1a3   :  { %v302_v15 = vmul.f32 %v1911_v8, %v295_v11 }
 0x1a4   :  { %v2373_v16 = vpop.eup %2372 }
 0x1a5   :  { %v2557_v18 = vadd.f32 %v1912_v13, %v302_v15  ;;  %v296_v19 = vmul.f32 %v2373_v16, %v287_v14 }
 0x1a7   :  { %v311_v20 = vpack.c.bf16 %v2557_v18, %v2555_v17  ;;  %v303_v21 = vmul.f32 %v1911_v8, %v296_v19 }
 0x1a9   :  { %2148 = vmatpush3.bf16.msra.mxu1 %v311_v20  ;;  %v2561_v22 = vadd.f32 %v1912_v13, %v303_v21 }
 0x1aa   :  { %2149 = vmatprep.subr.bf16.mxu1 %v2404_v47 }
 0x1ab   :  { %v312_v23 = vpack.c.bf16 %v2561_v22, %v2561_v22 }
 0x1ad   :  { %v324_v24 = vsel %vm322_vm3, %v312_v23, 0  ;;  %v2642_v23 = vld [vmem:[%s2947_s3 + $0x14] ss:$0 sps:$4 sm:$0x11]  }
 0x1ae   :  { %2150 = vmatpush3.bf16.msra.mxu1 %v324_v24 }
 0x1af   :  { %2155 = vmatprep.subr.bf16.mxu1 %v2404_v47 }
 0x1b1   :  { %2152 = vmatmul.mubr.msk.bf16.vlgmr.msra.gmra.mrb[0].mxu1 %vm318_vm4, %v2570_v25 }
 0x1b2   :  { %2156 = vmatpush3.bf16.msra.mxu1 %v311_v20  ;;  %2159 = vmatprep.mubr.msk.bf16.mxu1 %vm2405_vm2, %v2404_v47 }
 0x1b3   :  { %2157 = vmatprep.subr.bf16.mxu1 %v2404_v47 }
 0x1b6   :  { %2158 = vmatpush3.bf16.msra.mxu1 %v324_v24  ;;  %v2647_v24 = vld [vmem:[%s2947_s3] sm:$0xff]  }
 0x1b7   :  { %2163 = vmatprep.subr.bf16.mxu1 %v2404_v47 }
 0x1b9   :  { %2160 = vmatmul.mubr.msk.bf16.vlgmr.msra.gmra.mrb[4].mxu1 %vm318_vm4, %v2581_v26 }
 0x1ba   :  { %2167 = vmatprep.mubr.msk.bf16.mxu1 %vm2405_vm2, %v2404_v47  ;;  %2164 = vmatpush3.bf16.msra.mxu1 %v2330_v27 }
 0x1bb   :  { %2165 = vmatprep.subr.bf16.mxu1 %v2404_v47 }
 0x1be   :  { %2166 = vmatpush3.bf16.msra.mxu1 %v2331_v29  ;;  %v2658_v29 = vld [vmem:[%s2947_s3 + $0x8] ss:$0 sps:$4 sm:$0x11]  }
 0x1bf   :  { %2171 = vmatprep.subr.bf16.mxu1 %v2404_v47 }
 0x284   :  { %v360_v31 = vpop.f32.mrb[0].mxu1 }
 0x285   :  { %v2153_v32 = vpop.f32.mrb[1].mxu1 }
 0x286   :  { %v363_v33 = vpop.f32.mrb[2].mxu1 }
 0x287   :  { %v424_v34 = vpack.c.bf16 %v363_v33, %v360_v31  ;;  %v2154_v35 = vpop.f32.mrb[3].mxu1 }
 0x28c   :  { %v409_v36 = vpop.f32.mrb[4].mxu1 }
 0x28d   :  { %v2161_v37 = vpop.f32.mrb[5].mxu1 }
 0x28e   :  { %v412_v38 = vpop.f32.mrb[6].mxu1 }
 0x28f   :  { %v425_v40 = vpack.c.bf16 %v412_v38, %v409_v36  ;;  %v2162_v41 = vpop.f32.mrb[7].mxu1 }
 0x291   :  { %2168 = vmatmul.mubr.msk.bf16.vlgmr.msra.gmra.mrb[8].mxu1 %vm249_vm0, %v425_v40 }
 0x292   :  { %2172 = vmatpush3.bf16.msra.mxu1 %v2332_v39  ;;  %2175 = vmatprep.mubr.msk.bf16.mxu1 %vm2405_vm2, %v2404_v47 }
 0x293   :  { %2173 = vmatprep.subr.bf16.mxu1 %v2404_v47 }
 0x296   :  { %2174 = vmatpush3.bf16.msra.mxu1 %v2333_v43 }
 0x299   :  { %2176 = vmatmul.mubr.msk.bf16.vlgmr.msra.gmra.mrb[12].mxu1 %vm249_vm0, %v424_v34 }
 0x29a   :  { %2193 = vmatprep.mubr.msk.bf16.mxu1 %vm653_vm6, %v2632_v3 }
 0x364   :  { %v475_v49 = vpop.f32.mrb[8].mxu1 }
 0x365   :  { %v2169_v50 = vpop.f32.mrb[9].mxu1 }
 0x366   :  { %v478_v51 = vpop.f32.mrb[10].mxu1 }
 0x367   :  { %v2170_v52 = vpop.f32.mrb[11].mxu1 }
 0x36c   :  { %v531_v54 = vpop.f32.mrb[12].mxu1 }
 0x36d   :  { %v532_v55 = vadd.f32 %v531_v54, %v475_v49  ;;  %v2177_v56 = vpop.f32.mrb[13].mxu1  ;;  %v2343_v54 = vld [vmem:[%s2946_s4 + $0x48] sm:$0xff]  }
 0x36e   :  { %v534_v57 = vpop.f32.mrb[14].mxu1 }
 0x36f   :  { %v542_v58 = vadd.f32 %v1923_v53, %v532_v55  ;;  %v535_v59 = vadd.f32 %v534_v57, %v478_v51  ;;  %v2178_v60 = vpop.f32.mrb[15].mxu1 }
 0x371   :  { %v543_v61 = vadd.f32 %v1923_v53, %v535_v59  ;;  %v544_v62 = vmax.f32 %v542_v58, 0.0  ;;  %v2342_v53 = vld [vmem:[%s2946_s4 + $0x40] sm:$0xff]  }
 0x372   :  { %2203 = vmatprep.subr.bf16.mxu0 %v2342_v53 }
 0x373   :  { %v545_v63 = vmax.f32 %v543_v61, 0.0 }
 0x375   :  { %v546_v0 = vpack.c.bf16 %v545_v63, %v544_v62 }
 0x377   :  { %2188 = vmatmul.mubr.msk.bf16.vlgmr.msra.gmra.mrb[8].mxu0 %vm584_vm5, %v546_v0 }
 0x378   :  { %2204 = vmatpush3.bf16.msra.mxu0 %v2342_v53 }
 0x379   :  { %2205 = vmatprep.subr.bf16.mxu0 %v2343_v54 }
 0x37c   :  { %2206 = vmatpush3.bf16.msra.mxu0 %v2343_v54 }
 0x37d   :  { %2223 = vmatprep.subr.bf16.mxu0 %v2404_v47 }
 0x44a   :  { %v622_v2 = vpop.f32.mrb[8].mxu0 }
 0x44b   :  { %v623_v4 = vadd.f32 %v1932_v1, %v622_v2  ;;  %v2189_v5 = vpop.f32.mrb[9].mxu0 }
 0x44c   :  { %v625_v6 = vpop.f32.mrb[10].mxu0 }
 0x44d   :  { %v635_v7 = vadd.f32 0.01, %v623_v4  ;;  %v626_v8 = vadd.f32 %v1932_v1, %v625_v6  ;;  %v2190_v9 = vpop.f32.mrb[11].mxu0  ;;  %v1938_v10 = vadd.f32 -0.01, %v623_v4 }
 0x44e   :  { %vm633_vm7 = vcmp.lt.f32.partialorder %v623_v4, -0.01  ;;  %vm629_vm9 = vcmp.gt.f32.partialorder %v623_v4, 0.01 }
 0x44f   :  { %v1939_v11 = vadd.f32 -0.01, %v626_v8  ;;  %v636_v12 = vadd.f32 0.01, %v626_v8  ;;  %vm634_vm8 = vcmp.lt.f32.partialorder %v626_v8, -0.01 }
 0x450   :  { %v637_v13 = vsel %vm633_vm7, %v635_v7, 0.0  ;;  %vm630_vm10 = vcmp.gt.f32.partialorder %v626_v8, 0.01 }
 0x451   :  { %v638_v14 = vsel %vm634_vm8, %v636_v12, 0.0  ;;  %v639_v15 = vsel %vm629_vm9, %v1938_v10, %v637_v13 }
 0x452   :  { %v640_v16 = vsel %vm630_vm10, %v1939_v11, %v638_v14 }
 0x453   :  { %v641_v19 = vpack.c.bf16 %v640_v16, %v639_v15  ;;  %v1948_v16 = vld [vmem:[%s2945_s7 + $0x4] ss:$0 sm:$0xff] }
 0x455   :  { %651 = vrot.lane.b32.xlu0 %v641_v19, %s2406_s28  ;;  %v727_v27 = vsel %vm660_vm11, %v641_v19, 0 }
 0x4c7   :  { %v652_v20 = vpop.permute.xlu0 %651 }
 0x4c8   :  { %v662_v21 = vsel %vm660_vm11, %v652_v20, 0  ;;  %2299 = vmatprep.subr.msk.bf16.mxu1 %vm660_vm11, %v652_v20 }
 0x4c9   :  { %2192 = vmatpush3.bf16.msra.mxu1 %v662_v21 }
 0x4ca   :  { %2300 = vmatprep.subr.msk.bf16.mxu1 %vm660_vm11, %v641_v19 }
 0x4cc   :  { %2194 = vmatmul.mubr.msk.bf16.vlgmr.msra.gmra.mrb[16].mxu1 %vm653_vm6, %v2642_v23 }
 0x4cd   :  { %2198 = vmatpush3.bf16.msra.mxu1 %v727_v27  ;;  %2199 = vmatprep.mubr.msk.bf16.mxu1 %vm653_vm6, %v2647_v24 }
 0x4d4   :  { %2200 = vmatmul.mubr.msk.bf16.vlgmr.msra.gmra.mrb[20].mxu1 %vm653_vm6, %v2658_v29 }
 0x59f   :  { %v2195_v31 = vpop.f32.mrb[16].mxu1 }
 0x5a0   :  { %v698_v32 = vpop.f32.mrb[17].mxu1 }
 0x5a1   :  { %v2196_v33 = vpop.f32.mrb[18].mxu1 }
 0x5a2   :  { %v701_v34 = vpop.f32.mrb[19].mxu1 }
 0x5a7   :  { %v2201_v35 = vpop.f32.mrb[20].mxu1 }
 0x5a8   :  { %v772_v36 = vadd.f32 %v2201_v35, %v2195_v31  ;;  %v763_v37 = vpop.f32.mrb[21].mxu1  ;;  %v1949_v31 = vld [vmem:[%s2945_s7 + $0x5] ss:$0 sm:$0xff] }
 0x5a9   :  { %v764_v38 = vadd.f32 %v763_v37, %v698_v32  ;;  %v2202_v39 = vpop.f32.mrb[22].mxu1 }
 0x5aa   :  { %v779_v40 = vadd.f32 %v772_v36, %v2561_v22  ;;  %v766_v41 = vpop.f32.mrb[23].mxu1 }
 0x5ab   :  { %v777_v43 = vadd.f32 %v764_v38, %v2555_v17  ;;  %v767_v44 = vadd.f32 %v766_v41, %v701_v34 }
 0x5ac   :  { %v2665_v45 = vadd.f32 %v779_v40, %v2532_v42 }
 0x5ad   :  { %v2668_v46 = vadd.f32 %v777_v43, %v2516_v28  ;;  %v778_v48 = vadd.f32 %v767_v44, %v2557_v18  ;;  %v2344_v43 = vld [vmem:[%s2946_s4 + $0x60] sm:$0xff]   ;;  %v2345_v44 = vld [vmem:[%s2946_s4 + $0x68] sm:$0xff]  }
 0x5ae   :  { %v789_v49 = vsel %vm256_vm1, %v2665_v45, 0.0  ;;  %v797_v51 = vmul.f32 %v2665_v45, %v2665_v45  ;;  %2211 = vmatprep.subr.bf16.mxu1 %v2344_v43 }
 0x5af   :  { %790 = vadd.xlane.f32.xlu1 %v789_v49  ;;  %v2674_v50 = vadd.f32 %v778_v48, %v2518_v30  ;;  %v783_v22 = vsel %vm249_vm0, %v2668_v46, 0.0  ;;  %v795_v28 = vmul.f32 %v2668_v46, %v2668_v46  ;;  %2212 = vmatpush3.bf16.msra.mxu1 %v2344_v43  ;;  %v2346_v48 = vld [vmem:[%s2946_s4 + $0x70] sm:$0xff]   ;;  %v2347_v49 = vld [vmem:[%s2946_s4 + $0x78] sm:$0xff]  }
 0x5b0   :  { %v804_v52 = vsel %vm256_vm1, %v797_v51, 0.0  ;;  %2213 = vmatprep.subr.bf16.mxu1 %v2345_v44 }
 0x5b1   :  { %v786_v42 = vsel %vm249_vm0, %v2674_v50, 0.0  ;;  %v798_v17 = vsel %vm249_vm0, %v795_v28, 0.0  ;;  %v796_v18 = vmul.f32 %v2674_v50, %v2674_v50 }
 0x5b3   :  { %784 = vadd.xlane.f32.xlu1 %v783_v22  ;;  %v801_v30 = vsel %vm249_vm0, %v796_v18, 0.0  ;;  %2214 = vmatpush3.bf16.msra.mxu1 %v2345_v44  ;;  %v1954_v22 = vld [vmem:[%s2945_s7 + $0x6] ss:$0 sm:$0xff] }
 0x5b4   :  { %2215 = vmatprep.subr.bf16.mxu1 %v2346_v48 }
 0x5b7   :  { %787 = vadd.xlane.f32.xlu1 %v786_v42  ;;  %2216 = vmatpush3.bf16.msra.mxu1 %v2346_v48 }
 0x5b8   :  { %2217 = vmatprep.subr.bf16.mxu1 %v2347_v49 }
 0x5bb   :  { %799 = vadd.xlane.f32.xlu1 %v798_v17  ;;  %2218 = vmatpush3.bf16.msra.mxu1 %v2347_v49 }
 0x5bc   :  { %2239 = vmatprep.subr.bf16.mxu1 %v2404_v47 }
 0x5bf   :  { %802 = vadd.xlane.f32.xlu1 %v801_v30 }
 0x5c3   :  { %805 = vadd.xlane.f32.xlu1 %v804_v52 }
 0x63c   :  { %v791_v55 = vpop.xlane.xlu1 %790 }
 0x63d   :  { %v794_v1 = vmul.f32 0.03125, %v791_v55 }
 0x63f   :  { %v812_v8 = vmul.f32 %v794_v1, %v794_v1  ;;  %v818_v32 = vsub.f32 %v2665_v45, %v794_v1 }
 0x640   :  { %v785_v56 = vpop.xlane.xlu1 %784 }
 0x641   :  { %v792_v58 = vmul.f32 0.03125, %v785_v56 }
 0x643   :  { %v810_v60 = vmul.f32 %v792_v58, %v792_v58  ;;  %v816_v13 = vsub.f32 %v2668_v46, %v792_v58 }
 0x644   :  { %v788_v57 = vpop.xlane.xlu1 %787 }
 0x645   :  { %v793_v61 = vmul.f32 0.03125, %v788_v57 }
 0x647   :  { %v811_v2 = vmul.f32 %v793_v61, %v793_v61  ;;  %v817_v19 = vsub.f32 %v2674_v50, %v793_v61 }
 0x648   :  { %v800_v59 = vpop.xlane.xlu1 %799 }
 0x649   :  { %v807_v62 = vmul.f32 0.03125, %v800_v59 }
 0x64b   :  { %v813_v63 = vsub.f32 %v807_v62, %v810_v60 }
 0x64c   :  { %v803_v0 = vpop.xlane.xlu1 %802 }
 0x64d   :  { %v819_v4 = vadd.f32 1e-06, %v813_v63  ;;  %v808_v5 = vmul.f32 0.03125, %v803_v0 }
 0x64f   :  { %2374 = vrsqrt.f32 %v819_v4  ;;  %v814_v6 = vsub.f32 %v808_v5, %v811_v2 }
 0x650   :  { %v806_v7 = vpop.xlane.xlu1 %805 }
 0x651   :  { %v820_v9 = vadd.f32 1e-06, %v814_v6  ;;  %v809_v10 = vmul.f32 0.03125, %v806_v7 }
 0x653   :  { %2376 = vrsqrt.f32 %v820_v9  ;;  %v815_v11 = vsub.f32 %v809_v10, %v812_v8 }
 0x655   :  { %v821_v12 = vadd.f32 1e-06, %v815_v11 }
 0x657   :  { %2378 = vrsqrt.f32 %v821_v12 }
 0x659   :  { %v2375_v14 = vpop.eup %2374 }
 0x65a   :  { %v825_v15 = vmul.f32 %v2375_v14, %v816_v13 }
 0x65c   :  { %v832_v27 = vmul.f32 %v1948_v16, %v825_v15 }
 0x65d   :  { %v2377_v20 = vpop.eup %2376 }
 0x65e   :  { %v826_v21 = vmul.f32 %v2377_v20, %v817_v19  ;;  %v839_v36 = vadd.f32 %v1949_v31, %v832_v27 }
 0x660   :  { %v833_v33 = vmul.f32 %v1948_v16, %v826_v21  ;;  %v1967_v21 = vld [vmem:[%s2945_s7 + $0x7] ss:$0 sm:$0xff] }
 0x661   :  { %v2379_v34 = vpop.eup %2378 }
 0x662   :  { %v827_v35 = vmul.f32 %v2379_v34, %v818_v32  ;;  %v840_v37 = vadd.f32 %v1949_v31, %v833_v33 }
 0x664   :  { %v847_v38 = vpack.c.bf16 %v840_v37, %v839_v36  ;;  %v834_v39 = vmul.f32 %v1948_v16, %v827_v35 }
 0x666   :  { %2207 = vmatprep.mubr.msk.bf16.mxu0 %vm249_vm0, %v847_v38  ;;  %v841_v40 = vadd.f32 %v1949_v31, %v834_v39 }
 0x668   :  { %v848_v41 = vpack.c.bf16 %v841_v40, %v841_v40 }
 0x66a   :  { %2208 = vmatmul.mubr.msk.bf16.vlgmr.msra.gmra.mrb[12].mxu0 %vm249_vm0, %v848_v41 }
 0x66b   :  { %2227 = vmatprep.mubr.msk.bf16.mxu0 %vm2405_vm2, %v2404_v47 }
 0x73d   :  { %v2209_v42 = vpop.f32.mrb[12].mxu0 }
 0x73e   :  { %v914_v28 = vadd.f32 %v2209_v42, %v1954_v22  ;;  %v905_v17 = vpop.f32.mrb[13].mxu0 }
 0x73f   :  { %v906_v18 = vadd.f32 %v1954_v22, %v905_v17  ;;  %v2210_v30 = vpop.f32.mrb[14].mxu0 }
 0x740   :  { %v924_v51 = vmul.f32 0.044715, %v914_v28  ;;  %v908_v52 = vpop.f32.mrb[15].mxu0  ;;  %v921_v10 = vmul.f32 0.5, %v914_v28 }
 0x741   :  { %v922_v53 = vmul.f32 0.044715, %v906_v18  ;;  %v909_v54 = vadd.f32 %v1954_v22, %v908_v52  ;;  %v919_v11 = vmul.f32 0.5, %v906_v18 }
 0x742   :  { %v927_v55 = vmul.f32 %v924_v51, %v914_v28 }
 0x743   :  { %v925_v56 = vmul.f32 %v922_v53, %v906_v18  ;;  %v923_v57 = vmul.f32 0.044715, %v909_v54  ;;  %v920_v12 = vmul.f32 0.5, %v909_v54 }
 0x744   :  { %v930_v58 = vmul.f32 %v927_v55, %v914_v28 }
 0x745   :  { %v928_v59 = vmul.f32 %v925_v56, %v906_v18  ;;  %v926_v60 = vmul.f32 %v923_v57, %v909_v54 }
 0x746   :  { %v933_v61 = vadd.f32 %v930_v58, %v914_v28 }
 0x747   :  { %v931_v62 = vadd.f32 %v928_v59, %v906_v18  ;;  %v929_v63 = vmul.f32 %v926_v60, %v909_v54 }
 0x748   :  { %v936_v0 = vmul.f32 0.7978846, %v933_v61 }
 0x749   :  { %v934_v1 = vmul.f32 0.7978846, %v931_v62  ;;  %v932_v2 = vadd.f32 %v929_v63, %v909_v54 }
 0x74a   :  { %2380 = vtanh.f32 %v936_v0 }
 0x74b   :  { %2382 = vtanh.f32 %v934_v1  ;;  %v935_v4 = vmul.f32 0.7978846, %v932_v2 }
 0x74d   :  { %2384 = vtanh.f32 %v935_v4 }
 0x754   :  { %v2381_v5 = vpop.eup %2380 }
 0x755   :  { %v2383_v6 = vpop.eup %2382  ;;  %v942_v7 = vadd.f32 1.0, %v2381_v5 }
 0x756   :  { %v940_v8 = vadd.f32 1.0, %v2383_v6  ;;  %v1982_v6 = vld [vmem:[%s2945_s7 + $0x8] ss:$0 sm:$0xff] }
 0x757   :  { %v2385_v9 = vpop.eup %2384  ;;  %v945_v14 = vmul.f32 %v942_v7, %v921_v10 }
 0x758   :  { %v941_v13 = vadd.f32 1.0, %v2385_v9  ;;  %v943_v15 = vmul.f32 %v940_v8, %v919_v11  ;;  %v1983_v11 = vld [vmem:[%s2945_s7 + $0x9] ss:$0 sm:$0xff] }
 0x759   :  { %v956_v20 = vpack.c.bf16 %v945_v14, %v945_v14 }
 0x75a   :  { %v944_v16 = vmul.f32 %v941_v13, %v920_v12 }
 0x75c   :  { %v955_v19 = vpack.c.bf16 %v944_v16, %v943_v15 }
 0x75e   :  { %2219 = vmatprep.mubr.msk.bf16.mxu1 %vm584_vm5, %v955_v19 }
 0x75f   :  { %2220 = vmatmul.mubr.msk.bf16.vlgmr.msra.gmra.mrb[24].mxu1 %vm584_vm5, %v956_v20 }
 0x760   :  { %2243 = vmatprep.mubr.msk.bf16.mxu1 %vm2405_vm2, %v2404_v47 }
 0x832   :  { %v2221_v27 = vpop.f32.mrb[24].mxu1 }
 0x833   :  { %v1034_v31 = vadd.f32 %v2221_v27, %v1967_v21  ;;  %v1025_v32 = vpop.f32.mrb[25].mxu1 }
 0x834   :  { %v1026_v33 = vadd.f32 %v1967_v21, %v1025_v32  ;;  %v2222_v34 = vpop.f32.mrb[26].mxu1 }
 0x835   :  { %v2733_v35 = vadd.f32 %v1034_v31, %v2665_v45  ;;  %v1028_v36 = vpop.f32.mrb[27].mxu1  ;;  %v2350_v34 = vld [vmem:[%s2946_s4 + $0x90] sm:$0xff]  }
 0x836   :  { %v2736_v37 = vadd.f32 %v1026_v33, %v2668_v46  ;;  %v1029_v38 = vadd.f32 %v1967_v21, %v1028_v36  ;;  %v2348_v33 = vld [vmem:[%s2946_s4 + $0x80] sm:$0xff]   ;;  %2240 = vmatpush3.bf16.msra.mxu1 %v2350_v34 }
 0x837   :  { %v1057_v39 = vsel %vm256_vm1, %v2733_v35, 0.0  ;;  %v1065_v48 = vmul.f32 %v2733_v35, %v2733_v35  ;;  %2241 = vmatprep.subr.bf16.mxu1 %v2404_v47 }
 0x838   :  { %v2741_v40 = vadd.f32 %v1029_v38, %v2674_v50  ;;  %1058 = vadd.xlane.f32.xlu1 %v1057_v39  ;;  %v1051_v41 = vsel %vm249_vm0, %v2736_v37, 0.0  ;;  %v1063_v43 = vmul.f32 %v2736_v37, %v2736_v37 }
 0x839   :  { %1052 = vadd.xlane.f32.xlu0 %v1051_v41  ;;  %v1072_v49 = vsel %vm256_vm1, %v1065_v48, 0.0 }
 0x83a   :  { %v1054_v45 = vsel %vm249_vm0, %v2741_v40, 0.0  ;;  %v1066_v46 = vsel %vm249_vm0, %v1063_v43, 0.0  ;;  %v1064_v44 = vmul.f32 %v2741_v40, %v2741_v40 }
 0x83c   :  { %1055 = vadd.xlane.f32.xlu1 %v1054_v45  ;;  %v1069_v50 = vsel %vm249_vm0, %v1064_v44, 0.0 }
 0x840   :  { %1067 = vadd.xlane.f32.xlu1 %v1066_v46 }
 0x844   :  { %1070 = vadd.xlane.f32.xlu1 %v1069_v50 }
 0x848   :  { %1073 = vadd.xlane.f32.xlu1 %v1072_v49  ;;  %v2352_v49 = vld [vmem:[%s2946_s4 + $0xa0] sm:$0xff]  }
 0x8c5   :  { %v1059_v22 = vpop.xlane.xlu1 %1058 }
 0x8c6   :  { %v1053_v42 = vpop.xlane.xlu0 %1052  ;;  %v1062_v55 = vmul.f32 0.03125, %v1059_v22  ;;  %v2354_v22 = vld [vmem:[%s2946_s4 + $0xb0] sm:$0xff]  }
 0x8c7   :  { %v1060_v17 = vmul.f32 0.03125, %v1053_v42  ;;  %v2355_v42 = vld [vmem:[%s2946_s4 + $0xb8] sm:$0xff]  }
 0x8c8   :  { %v1080_v61 = vmul.f32 %v1062_v55, %v1062_v55  ;;  %v1086_v12 = vsub.f32 %v2733_v35, %v1062_v55 }
 0x8c9   :  { %v1056_v28 = vpop.xlane.xlu1 %1055  ;;  %v1078_v30 = vmul.f32 %v1060_v17, %v1060_v17  ;;  %v1084_v2 = vsub.f32 %v2736_v37, %v1060_v17 }
 0x8ca   :  { %v1061_v51 = vmul.f32 0.03125, %v1056_v28 }
 0x8cc   :  { %v1079_v56 = vmul.f32 %v1061_v51, %v1061_v51  ;;  %v1085_v7 = vsub.f32 %v2741_v40, %v1061_v51  ;;  %v2000_v51 = vld [vmem:[%s2945_s7 + $0xa] ss:$0 sm:$0xff] }
 0x8cd   :  { %v1068_v18 = vpop.xlane.xlu1 %1067 }
 0x8ce   :  { %v1075_v52 = vmul.f32 0.03125, %v1068_v18 }
 0x8d0   :  { %v1081_v53 = vsub.f32 %v1075_v52, %v1078_v30 }
 0x8d1   :  { %v1071_v54 = vpop.xlane.xlu1 %1070 }
 0x8d2   :  { %v1087_v57 = vadd.f32 1e-06, %v1081_v53  ;;  %v1076_v58 = vmul.f32 0.03125, %v1071_v54 }
 0x8d4   :  { %2386 = vrsqrt.f32 %v1087_v57  ;;  %v1082_v59 = vsub.f32 %v1076_v58, %v1079_v56 }
 0x8d5   :  { %v1074_v60 = vpop.xlane.xlu1 %1073 }
 0x8d6   :  { %v1088_v62 = vadd.f32 1e-06, %v1082_v59  ;;  %v1077_v63 = vmul.f32 0.03125, %v1074_v60 }
 0x8d8   :  { %2388 = vrsqrt.f32 %v1088_v62  ;;  %v1083_v0 = vsub.f32 %v1077_v63, %v1080_v61  ;;  %v2009_v62 = vld [vmem:[%s2945_s7 + $0xb] ss:$0 sm:$0xff] }
 0x8da   :  { %v1089_v1 = vadd.f32 1e-06, %v1083_v0 }
 0x8dc   :  { %2390 = vrsqrt.f32 %v1089_v1 }
 0x8de   :  { %v2387_v4 = vpop.eup %2386 }
 0x8df   :  { %v1093_v5 = vmul.f32 %v2387_v4, %v1084_v2 }
 0x8e1   :  { %v1100_v10 = vmul.f32 %v1982_v6, %v1093_v5 }
 0x8e2   :  { %v2389_v8 = vpop.eup %2388 }
 0x8e3   :  { %v1094_v9 = vmul.f32 %v2389_v8, %v1085_v7  ;;  %v2765_v15 = vadd.f32 %v1983_v11, %v1100_v10 }
 0x8e5   :  { %v1101_v13 = vmul.f32 %v1982_v6, %v1094_v9 }
 0x8e6   :  { %v2391_v14 = vpop.eup %2390 }
 0x8e7   :  { %v2767_v16 = vadd.f32 %v1983_v11, %v1101_v13  ;;  %v1095_v19 = vmul.f32 %v2391_v14, %v1086_v12 }
 0x8e9   :  { %v1110_v20 = vpack.c.bf16 %v2767_v16, %v2765_v15  ;;  %v1102_v21 = vmul.f32 %v1982_v6, %v1095_v19 }
 0x8eb   :  { %2224 = vmatpush3.bf16.msra.mxu0 %v1110_v20  ;;  %v2771_v27 = vadd.f32 %v1983_v11, %v1102_v21 }
 0x8ec   :  { %2225 = vmatprep.subr.bf16.mxu0 %v2404_v47 }
 0x8ed   :  { %v1111_v31 = vpack.c.bf16 %v2771_v27, %v2771_v27 }
 0x8ef   :  { %v1113_v32 = vsel %vm322_vm3, %v1111_v31, 0 }
 0x8f0   :  { %2226 = vmatpush3.bf16.msra.mxu0 %v1113_v32 }
 0x8f1   :  { %2231 = vmatprep.subr.bf16.mxu0 %v2404_v47 }
 0x8f3   :  { %2228 = vmatmul.mubr.msk.bf16.vlgmr.msra.gmra.mrb[16].mxu0 %vm318_vm4, %v2570_v25  ;;  %v2349_v25 = vld [vmem:[%s2946_s4 + $0x88] sm:$0xff]  }
 0x8f4   :  { %2232 = vmatpush3.bf16.msra.mxu0 %v1110_v20  ;;  %2235 = vmatprep.mubr.msk.bf16.mxu0 %vm2405_vm2, %v2404_v47 }
 0x8f5   :  { %2233 = vmatprep.subr.bf16.mxu0 %v2404_v47 }
 0x8f8   :  { %2234 = vmatpush3.bf16.msra.mxu0 %v1113_v32 }
 0x8f9   :  { %2247 = vmatprep.subr.bf16.mxu0 %v2404_v47 }
 0x8fb   :  { %2236 = vmatmul.mubr.msk.bf16.vlgmr.msra.gmra.mrb[20].mxu0 %vm318_vm4, %v2581_v26  ;;  %v2351_v26 = vld [vmem:[%s2946_s4 + $0x98] sm:$0xff]  }
 0x8fc   :  { %2248 = vmatpush3.bf16.msra.mxu0 %v2348_v33  ;;  %2251 = vmatprep.mubr.msk.bf16.mxu0 %vm2405_vm2, %v2404_v47 }
 0x8fd   :  { %2249 = vmatprep.subr.bf16.mxu0 %v2404_v47  ;;  %2242 = vmatpush3.bf16.msra.mxu1 %v2351_v26 }
 0x8fe   :  { %2255 = vmatprep.subr.bf16.mxu1 %v2404_v47 }
 0x900   :  { %2250 = vmatpush3.bf16.msra.mxu0 %v2349_v25 }
 0x9c6   :  { %v1149_v36 = vpop.f32.mrb[16].mxu0 }
 0x9c7   :  { %v2229_v38 = vpop.f32.mrb[17].mxu0 }
 0x9c8   :  { %v1152_v39 = vpop.f32.mrb[18].mxu0 }
 0x9c9   :  { %v1206_v41 = vpack.c.bf16 %v1152_v39, %v1149_v36  ;;  %v2230_v45 = vpop.f32.mrb[19].mxu0 }
 0x9cb   :  { %2252 = vmatmul.mubr.msk.bf16.vlgmr.msra.gmra.mrb[24].mxu0 %vm249_vm0, %v1206_v41 }
 0x9cc   :  { %2269 = vmatprep.mubr.msk.bf16.mxu0 %vm653_vm6, %v2632_v3  ;;  %v2353_v3 = vld [vmem:[%s2946_s4 + $0xa8] sm:$0xff]  }
 0x9ce   :  { %v1190_v43 = vpop.f32.mrb[20].mxu0 }
 0x9cf   :  { %v2237_v46 = vpop.f32.mrb[21].mxu0 }
 0x9d0   :  { %v1193_v44 = vpop.f32.mrb[22].mxu0 }
 0x9d1   :  { %v1207_v50 = vpack.c.bf16 %v1193_v44, %v1190_v43  ;;  %v2238_v48 = vpop.f32.mrb[23].mxu0 }
 0x9d3   :  { %2244 = vmatmul.mubr.msk.bf16.vlgmr.msra.gmra.mrb[28].mxu1 %vm249_vm0, %v1207_v50 }
 0x9d4   :  { %2263 = vmatprep.mubr.msk.bf16.mxu1 %vm2405_vm2, %v2404_v47  ;;  %2256 = vmatpush3.bf16.msra.mxu1 %v2352_v49 }
 0x9d5   :  { %2257 = vmatprep.subr.bf16.mxu1 %v2404_v47 }
 0x9d8   :  { %2258 = vmatpush3.bf16.msra.mxu1 %v2353_v3  ;;  %v2356_v3 = vld [vmem:[%s2946_s4 + $0xc0] sm:$0xff]  }
 0x9d9   :  { %2259 = vmatprep.subr.bf16.mxu1 %v2404_v47 }
 0x9dc   :  { %2260 = vmatpush3.bf16.msra.mxu1 %v2354_v22  ;;  %v2357_v22 = vld [vmem:[%s2946_s4 + $0xc8] sm:$0xff]  }
 0x9dd   :  { %2261 = vmatprep.subr.bf16.mxu1 %v2404_v47 }
 0x9e0   :  { %2262 = vmatpush3.bf16.msra.mxu1 %v2355_v42 }
 0x9e1   :  { %2279 = vmatprep.subr.bf16.mxu1 %v2356_v3 }
 0xa9e   :  { %v1313_v28 = vpop.f32.mrb[24].mxu0 }
 0xa9f   :  { %v2253_v17 = vpop.f32.mrb[25].mxu0 }
 0xaa0   :  { %v1316_v18 = vpop.f32.mrb[26].mxu0 }
 0xaa1   :  { %v2254_v30 = vpop.f32.mrb[27].mxu0 }
 0xaa6   :  { %v1257_v52 = vpop.f32.mrb[28].mxu1 }
 0xaa7   :  { %v1314_v53 = vadd.f32 %v1313_v28, %v1257_v52  ;;  %v2245_v54 = vpop.f32.mrb[29].mxu1 }
 0xaa8   :  { %v1260_v55 = vpop.f32.mrb[30].mxu1 }
 0xaa9   :  { %v1324_v56 = vadd.f32 %v2000_v51, %v1314_v53  ;;  %v1317_v57 = vadd.f32 %v1316_v18, %v1260_v55  ;;  %v2246_v47 = vpop.f32.mrb[31].mxu1 }
 0xaab   :  { %v1325_v58 = vadd.f32 %v2000_v51, %v1317_v57  ;;  %v1326_v59 = vmax.f32 %v1324_v56, 0.0 }
 0xaad   :  { %v1327_v60 = vmax.f32 %v1325_v58, 0.0 }
 0xaaf   :  { %v1328_v61 = vpack.c.bf16 %v1327_v60, %v1326_v59 }
 0xab1   :  { %2264 = vmatmul.mubr.msk.bf16.vlgmr.msra.gmra.mrb[32].mxu1 %vm584_vm5, %v1328_v61 }
 0xab2   :  { %2280 = vmatpush3.bf16.msra.mxu1 %v2356_v3 }
 0xab3   :  { %2281 = vmatprep.subr.bf16.mxu1 %v2357_v22 }
 0xab6   :  { %2282 = vmatpush3.bf16.msra.mxu1 %v2357_v22 }
 0xb84   :  { %v1403_v63 = vpop.f32.mrb[32].mxu1 }
 0xb85   :  { %v1404_v0 = vadd.f32 %v2009_v62, %v1403_v63  ;;  %v2265_v1 = vpop.f32.mrb[33].mxu1 }
 0xb86   :  { %v1406_v2 = vpop.f32.mrb[34].mxu1 }
 0xb87   :  { %v1416_v4 = vadd.f32 0.01, %v1404_v0  ;;  %v1407_v5 = vadd.f32 %v2009_v62, %v1406_v2  ;;  %v2266_v6 = vpop.f32.mrb[35].mxu1  ;;  %v2015_v7 = vadd.f32 -0.01, %v1404_v0 }
 0xb88   :  { %vm1414_vm12 = vcmp.lt.f32.partialorder %v1404_v0, -0.01  ;;  %vm1410_vm14 = vcmp.gt.f32.partialorder %v1404_v0, 0.01  ;;  %v2021_v6 = vld [vmem:[%s2945_s7 + $0xc] ss:$0 sm:$0xff] }
 0xb89   :  { %v2016_v8 = vadd.f32 -0.01, %v1407_v5  ;;  %v1417_v9 = vadd.f32 0.01, %v1407_v5  ;;  %vm1415_vm13 = vcmp.lt.f32.partialorder %v1407_v5, -0.01 }
 0xb8a   :  { %v1418_v10 = vsel %vm1414_vm12, %v1416_v4, 0.0  ;;  %vm1411_vm15 = vcmp.gt.f32.partialorder %v1407_v5, 0.01 }
 0xb8b   :  { %v1419_v11 = vsel %vm1415_vm13, %v1417_v9, 0.0  ;;  %v1420_v12 = vsel %vm1410_vm14, %v2015_v7, %v1418_v10 }
 0xb8c   :  { %v1421_v13 = vsel %vm1411_vm15, %v2016_v8, %v1419_v11  ;;  %v2022_v11 = vld [vmem:[%s2945_s7 + $0xd] ss:$0 sm:$0xff] }
 0xb8d   :  { %v1422_v14 = vpack.c.bf16 %v1421_v13, %v1420_v12 }
 0xb8f   :  { %1424 = vrot.lane.b32.xlu1 %v1422_v14, %s2406_s28  ;;  %v1478_v21 = vsel %vm660_vm11, %v1422_v14, 0 }
 0xc01   :  { %v1425_v19 = vpop.permute.xlu1 %1424 }
 0xc02   :  { %v1427_v20 = vsel %vm660_vm11, %v1425_v19, 0  ;;  %2301 = vmatprep.subr.msk.bf16.mxu0 %vm660_vm11, %v1425_v19 }
 0xc03   :  { %2268 = vmatpush3.bf16.msra.mxu0 %v1427_v20 }
 0xc04   :  { %2302 = vmatprep.subr.msk.bf16.mxu0 %vm660_vm11, %v1422_v14 }
 0xc06   :  { %2270 = vmatmul.mubr.msk.bf16.vlgmr.msra.gmra.mrb[28].mxu0 %vm653_vm6, %v2642_v23 }
 0xc07   :  { %2274 = vmatpush3.bf16.msra.mxu0 %v1478_v21  ;;  %2275 = vmatprep.mubr.msk.bf16.mxu0 %vm653_vm6, %v2647_v24 }
 0xc0e   :  { %2276 = vmatmul.mubr.msk.bf16.vlgmr.msra.gmra.mrb[32].mxu0 %vm653_vm6, %v2658_v29 }
 0xcd9   :  { %v2271_v31 = vpop.f32.mrb[28].mxu0 }
 0xcda   :  { %v1463_v32 = vpop.f32.mrb[29].mxu0 }
 0xcdb   :  { %v2272_v33 = vpop.f32.mrb[30].mxu0 }
 0xcdc   :  { %v1466_v25 = vpop.f32.mrb[31].mxu0 }
 0xce1   :  { %v2277_v34 = vpop.f32.mrb[32].mxu0 }
 0xce2   :  { %v1523_v26 = vadd.f32 %v2277_v34, %v2271_v31  ;;  %v1514_v36 = vpop.f32.mrb[33].mxu0  ;;  %v2358_v34 = vld [vmem:[%s2946_s4 + $0xe0] sm:$0xff]  }
 0xce3   :  { %v1515_v38 = vadd.f32 %v1514_v36, %v1463_v32  ;;  %v2278_v39 = vpop.f32.mrb[34].mxu0  ;;  %2287 = vmatprep.subr.bf16.mxu0 %v2358_v34  ;;  %v2360_v36 = vld [vmem:[%s2946_s4 + $0xf0] sm:$0xff]  }
 0xce4   :  { %v1530_v23 = vadd.f32 %v1523_v26, %v2771_v27  ;;  %v1517_v41 = vpop.f32.mrb[35].mxu0  ;;  %v2359_v26 = vld [vmem:[%s2946_s4 + $0xe8] sm:$0xff]   ;;  %2288 = vmatpush3.bf16.msra.mxu0 %v2358_v34 }
 0xce5   :  { %v1528_v45 = vadd.f32 %v1515_v38, %v2765_v15  ;;  %v1518_v43 = vadd.f32 %v1517_v41, %v1466_v25  ;;  %2289 = vmatprep.subr.bf16.mxu0 %v2359_v26  ;;  %v2361_v38 = vld [vmem:[%s2946_s4 + $0xf8] sm:$0xff]   ;;  %v2027_v39 = vld [vmem:[%s2945_s7 + $0xe] ss:$0 sm:$0xff] }
 0xce6   :  { %v2845_v24 = vadd.f32 %v1530_v23, %v2733_v35 }
 0xce7   :  { %v2848_v29 = vadd.f32 %v1528_v45, %v2736_v37  ;;  %v1529_v46 = vadd.f32 %v1518_v43, %v2767_v16 }
 0xce8   :  { %v1540_v44 = vsel %vm256_vm1, %v2845_v24, 0.0  ;;  %v1548_v49 = vmul.f32 %v2845_v24, %v2845_v24  ;;  %2290 = vmatpush3.bf16.msra.mxu0 %v2359_v26 }
 0xce9   :  { %1541 = vadd.xlane.f32.xlu0 %v1540_v44  ;;  %v1546_v50 = vmul.f32 %v2848_v29, %v2848_v29  ;;  %v2857_v15 = vadd.f32 %v1529_v46, %v2741_v40  ;;  %v1534_v35 = vsel %vm249_vm0, %v2848_v29, 0.0  ;;  %2291 = vmatprep.subr.bf16.mxu0 %v2360_v36 }
 0xcea   :  { %v1555_v40 = vsel %vm256_vm1, %v1548_v49, 0.0 }
 0xceb   :  { %v1549_v27 = vsel %vm249_vm0, %v1546_v50, 0.0  ;;  %v1537_v37 = vsel %vm249_vm0, %v2857_v15, 0.0  ;;  %v1547_v16 = vmul.f32 %v2857_v15, %v2857_v15 }
 0xcec   :  { %1550 = vadd.xlane.f32.xlu1 %v1549_v27  ;;  %2292 = vmatpush3.bf16.msra.mxu0 %v2360_v36 }
 0xced   :  { %1535 = vadd.xlane.f32.xlu0 %v1534_v35  ;;  %v1552_v48 = vsel %vm249_vm0, %v1547_v16, 0.0  ;;  %2293 = vmatprep.subr.bf16.mxu0 %v2361_v38 }
 0xcf0   :  { %2294 = vmatpush3.bf16.msra.mxu0 %v2361_v38 }
 0xcf1   :  { %1538 = vadd.xlane.f32.xlu0 %v1537_v37 }
 0xcf5   :  { %1553 = vadd.xlane.f32.xlu0 %v1552_v48 }
 0xcf9   :  { %1556 = vadd.xlane.f32.xlu0 %v1555_v40 }
 0xd76   :  { %v1542_v42 = vpop.xlane.xlu0 %1541 }
 0xd77   :  { %v1545_v57 = vmul.f32 0.03125, %v1542_v42 }
 0xd79   :  { %v1551_v28 = vpop.xlane.xlu1 %1550  ;;  %v1563_v61 = vmul.f32 %v1545_v57, %v1545_v57  ;;  %v1569_v12 = vsub.f32 %v2845_v24, %v1545_v57 }
 0xd7a   :  { %v1536_v17 = vpop.xlane.xlu0 %1535  ;;  %v1558_v30 = vmul.f32 0.03125, %v1551_v28 }
 0xd7b   :  { %v1543_v18 = vmul.f32 0.03125, %v1536_v17 }
 0xd7d   :  { %v1561_v51 = vmul.f32 %v1543_v18, %v1543_v18  ;;  %v1567_v4 = vsub.f32 %v2848_v29, %v1543_v18 }
 0xd7e   :  { %v1539_v52 = vpop.xlane.xlu0 %1538 }
 0xd7f   :  { %v1564_v53 = vsub.f32 %v1558_v30, %v1561_v51  ;;  %v1544_v54 = vmul.f32 0.03125, %v1539_v52 }
 0xd81   :  { %v1570_v55 = vadd.f32 1e-06, %v1564_v53  ;;  %v1562_v47 = vmul.f32 %v1544_v54, %v1544_v54  ;;  %v1568_v7 = vsub.f32 %v2857_v15, %v1544_v54 }
 0xd82   :  { %v1554_v56 = vpop.xlane.xlu0 %1553 }
 0xd83   :  { %2392 = vrsqrt.f32 %v1570_v55  ;;  %v1559_v58 = vmul.f32 0.03125, %v1554_v56 }
 0xd85   :  { %v1565_v59 = vsub.f32 %v1559_v58, %v1562_v47 }
 0xd86   :  { %v1557_v60 = vpop.xlane.xlu0 %1556 }
 0xd87   :  { %v1571_v62 = vadd.f32 1e-06, %v1565_v59  ;;  %v1560_v63 = vmul.f32 0.03125, %v1557_v60 }
 0xd89   :  { %2394 = vrsqrt.f32 %v1571_v62  ;;  %v1566_v0 = vsub.f32 %v1560_v63, %v1563_v61 }
 0xd8b   :  { %v1572_v1 = vadd.f32 1e-06, %v1566_v0 }
 0xd8d   :  { %v2393_v2 = vpop.eup %2392  ;;  %2396 = vrsqrt.f32 %v1572_v1  ;;  %v2364_v1 = vld [vmem:[%s2948_s6 + $0x4] ss:$8 sps:$4 sm:$0xff]  }
 0xd8e   :  { %v1576_v5 = vmul.f32 %v2393_v2, %v1567_v4  ;;  %v2362_v2 = vld [vmem:[%s2948_s6] ss:$8 sps:$4 sm:$0xff]   ;;  %1825 = vmatprep.subr.bf16.mxu1 %v2364_v1  ;;  %v2367_v4 = vld [vmem:[%s2948_s6 + $0x14] ss:$8 sps:$4 sm:$0xff]  }
 0xd90   :  { %v1583_v9 = vmul.f32 %v2021_v6, %v1576_v5  ;;  %v2365_v5 = vld [vmem:[%s2948_s6 + $0x10] ss:$8 sps:$4 sm:$0xff]  }
 0xd92   :  { %v1590_v19 = vadd.f32 %v2022_v11, %v1583_v9 }
 0xd93   :  { %v2395_v8 = vpop.eup %2394 }
 0xd94   :  { %v1577_v10 = vmul.f32 %v2395_v8, %v1568_v7  ;;  %v2040_v7 = vld [vmem:[%s2945_s7 + $0xf] ss:$0 sm:$0xff] }
 0xd96   :  { %v1584_v13 = vmul.f32 %v2021_v6, %v1577_v10 }
 0xd97   :  { %v2397_v14 = vpop.eup %2396 }
 0xd98   :  { %v1578_v20 = vmul.f32 %v2397_v14, %v1569_v12  ;;  %v1591_v21 = vadd.f32 %v2022_v11, %v1584_v13 }
 0xd9a   :  { %v1598_v31 = vpack.c.bf16 %v1591_v21, %v1590_v19  ;;  %v1585_v32 = vmul.f32 %v2021_v6, %v1578_v20  ;;  %v2407_v6 = vmov 0  }
 0xd9c   :  { %2283 = vmatprep.mubr.msk.bf16.mxu1 %vm249_vm0, %v1598_v31  ;;  %v1592_v33 = vadd.f32 %v2022_v11, %v1585_v32 }
 0xd9e   :  { %v1599_v25 = vpack.c.bf16 %v1592_v33, %v1592_v33 }
 0xda0   :  { %2284 = vmatmul.mubr.msk.bf16.vlgmr.msra.gmra.mrb[36].mxu1 %vm249_vm0, %v1599_v25 }
 0xda1   :  { %1826 = vmatpush1.bf16.msra.mxu1 %v2362_v2  ;;  %1857 = vmatprep.mubr.bf16.mxu1 %v2407_v6 }
 0xda2   :  { %1827 = vmatprep.subr.bf16.mxu1 %v2367_v4 }
 0xda5   :  { %1828 = vmatpush1.bf16.msra.mxu1 %v2365_v5 }
 0xe73   :  { %v2285_v23 = vpop.f32.mrb[36].mxu1 }
 0xe74   :  { %v1665_v41 = vadd.f32 %v2285_v23, %v2027_v39  ;;  %v1656_v45 = vpop.f32.mrb[37].mxu1 }
 0xe75   :  { %v1657_v43 = vadd.f32 %v2027_v39, %v1656_v45  ;;  %v2286_v46 = vpop.f32.mrb[38].mxu1 }
 0xe76   :  { %v1675_v44 = vmul.f32 0.044715, %v1665_v41  ;;  %v1659_v50 = vpop.f32.mrb[39].mxu1  ;;  %v1672_v57 = vmul.f32 0.5, %v1665_v41 }
 0xe77   :  { %v1673_v27 = vmul.f32 0.044715, %v1657_v43  ;;  %v1660_v35 = vadd.f32 %v2027_v39, %v1659_v50  ;;  %v1670_v47 = vmul.f32 0.5, %v1657_v43 }
 0xe78   :  { %v1678_v37 = vmul.f32 %v1675_v44, %v1665_v41 }
 0xe79   :  { %v1676_v16 = vmul.f32 %v1673_v27, %v1657_v43  ;;  %v1674_v48 = vmul.f32 0.044715, %v1660_v35  ;;  %v1671_v58 = vmul.f32 0.5, %v1660_v35 }
 0xe7a   :  { %v1681_v49 = vmul.f32 %v1678_v37, %v1665_v41 }
 0xe7b   :  { %v1679_v40 = vmul.f32 %v1676_v16, %v1657_v43  ;;  %v1677_v3 = vmul.f32 %v1674_v48, %v1660_v35 }
 0xe7c   :  { %v1684_v22 = vadd.f32 %v1681_v49, %v1665_v41 }
 0xe7d   :  { %v1682_v42 = vadd.f32 %v1679_v40, %v1657_v43  ;;  %v1680_v28 = vmul.f32 %v1677_v3, %v1660_v35 }
 0xe7e   :  { %v1687_v17 = vmul.f32 0.7978846, %v1684_v22 }
 0xe7f   :  { %v1685_v18 = vmul.f32 0.7978846, %v1682_v42  ;;  %v1683_v30 = vadd.f32 %v1680_v28, %v1660_v35 }
 0xe80   :  { %2398 = vtanh.f32 %v1687_v17 }
 0xe81   :  { %2400 = vtanh.f32 %v1685_v18  ;;  %v1686_v51 = vmul.f32 0.7978846, %v1683_v30 }
 0xe83   :  { %2402 = vtanh.f32 %v1686_v51 }
 0xe8a   :  { %v2399_v52 = vpop.eup %2398 }
 0xe8b   :  { %v2401_v53 = vpop.eup %2400  ;;  %v1693_v54 = vadd.f32 1.0, %v2399_v52 }
 0xe8c   :  { %v1691_v55 = vadd.f32 1.0, %v2401_v53 }
 0xe8d   :  { %v2403_v56 = vpop.eup %2402  ;;  %v1696_v60 = vmul.f32 %v1693_v54, %v1672_v57 }
 0xe8e   :  { %v1692_v59 = vadd.f32 1.0, %v2403_v56  ;;  %v1694_v61 = vmul.f32 %v1691_v55, %v1670_v47 }
 0xe8f   :  { %v1707_v0 = vpack.c.bf16 %v1696_v60, %v1696_v60 }
 0xe90   :  { %v1695_v62 = vmul.f32 %v1692_v59, %v1671_v58 }
 0xe92   :  { %v1706_v63 = vpack.c.bf16 %v1695_v62, %v1694_v61 }
 0xe94   :  { %2295 = vmatprep.mubr.msk.bf16.mxu0 %vm584_vm5, %v1706_v63 }
 0xe95   :  { %2296 = vmatmul.mubr.msk.bf16.vlgmr.msra.gmra.mrb[36].mxu0 %vm584_vm5, %v1707_v0 }
 0xf68   :  { %v2297_v8 = vpop.f32.mrb[36].mxu0 }
 0xf69   :  { %v1776_v9 = vpop.f32.mrb[37].mxu0  ;;  %v1785_v20 = vadd.f32 %v2297_v8, %v2040_v7 }
 0xf6a   :  { %v1777_v10 = vadd.f32 %v2040_v7, %v1776_v9  ;;  %v2298_v11 = vpop.f32.mrb[38].mxu0 }
 0xf6b   :  { %v1779_v12 = vpop.f32.mrb[39].mxu0  ;;  %v1792_v31 = vadd.f32 %v1785_v20, %v2845_v24 }
 0xf6c   :  { %v1780_v13 = vadd.f32 %v2040_v7, %v1779_v12  ;;  %v1790_v14 = vadd.f32 %v1777_v10, %v2848_v29 }
 0xf6d   :  { %v1794_v32 = vpack.c.bf16 %v1792_v31, %v1792_v31 }
 0xf6e   :  { %v1791_v19 = vadd.f32 %v1780_v13, %v2857_v15 }
 0xf70   :  { %v1793_v21 = vpack.c.bf16 %v1791_v19, %v1790_v14 }
 0xf72   :  { %2051 = vmatmul.mubr.msk.bf16.vlgmr.msra.gmra.mrb[40].mxu1 %vm249_vm0, %v1793_v21 }
 0xf73   :  { %1867 = vmatprep.mubr.bf16.mxu1 %v2407_v6 }
 0xf7a   :  { %2052 = vmatmul.mubr.msk.bf16.gmra.mrb[44].mxu1 %vm249_vm0, %v1794_v32 }
0x1045   :  { %v1859_v33 = vpop.f32.mrb[40].mxu1 }
0x1046   :  { %1876 = vst [vmem:[%s2949_s8] sm:$0xff] %v1859_v33  ;;  %v1861_v25 = vpop.f32.mrb[41].mxu1 }
0x1047   :  { %1877 = vst [vmem:[%s2949_s8 + $0x8] sm:$0xff] %v1861_v25  ;;  %v1863_v29 = vpop.f32.mrb[42].mxu1 }
0x1048   :  { %1878 = vst [vmem:[%s2949_s8 + $0x10] sm:$0xff] %v1863_v29  ;;  %v1865_v15 = vpop.f32.mrb[43].mxu1 }
0x1049   :  { %1879 = vst [vmem:[%s2949_s8 + $0x18] sm:$0xff] %v1865_v15 }
0x104d   :  { %v1869_v24 = vpop.f32.mrb[44].mxu1 }
0x104e   :  { %1880 = vst [vmem:[%s2949_s8 + $0x20] sm:$0x3] %v1869_v24  ;;  %v1871_v34 = vpop.f32.mrb[45].mxu1 }
0x104f   :  { %1881 = vst [vmem:[%s2949_s8 + $0x28] sm:$0x3] %v1871_v34  ;;  %v1873_v26 = vpop.f32.mrb[46].mxu1 }
0x1050   :  { %v1874_v36 = vpop.f32.mrb[47].mxu1 }

</bundles_post_ra>
